<compile_context>
chip_gen: v6e
topology: v6e:2x2x1
jax: 0.10.0
libtpu: 0.0.40
codegen_flags: <defaults>
</compile_context>

<pallas_src>
import functools
import math

import jax
import jax.numpy as jnp
from jax import lax
from jax.experimental import pallas as pl
from jax.experimental.pallas import tpu as pltpu


# ----------------------------- fused Pallas kernel -----------------------------

def _layer_norm(z, g, b, eps=1e-5):
    mu = jnp.mean(z, axis=-1, keepdims=True)
    var = jnp.mean((z - mu) ** 2, axis=-1, keepdims=True)   # biased var (torch LN)
    return (z - mu) * lax.rsqrt(var + eps) * g + b


def _gelu_exact(y):      # nn.GELU() exact erf form
    return 0.5 * y * (1.0 + lax.erf(y * jnp.float32(1.0 / math.sqrt(2.0))))


def _encoder_kernel(x0_ref, mask_ref,
                    qkv_w_ref, qkv_b_ref, o_w_ref, o_b_ref,
                    ln1_g_ref, ln1_b_ref,
                    fc1_w_ref, fc1_b_ref, fc2_w_ref, fc2_b_ref,
                    ln2_g_ref, ln2_b_ref,
                    w1_ref, b1_ref, w2_ref,
                    out_ref, *, num_layers, num_heads):
    # One grid step == one batch element.  Everything stays in VMEM.
    x = x0_ref[0]                     # [S, D]  (embedding + positional encoding)
    addmask = mask_ref[0]             # [S, S]  additive: 0 in-band & unpadded, else -inf
    s, d = x.shape
    hd = d // num_heads
    inv_sqrt_hd = jnp.float32(1.0 / math.sqrt(hd))
    neg_inf = jnp.float32(-jnp.inf)

    for l in range(num_layers):                       # static unroll (L small)
        # ---- MultiHeadAttention (sliding window) ----
        qkv = jnp.dot(x, qkv_w_ref[l],
                      preferred_element_type=jnp.float32) + qkv_b_ref[l]   # [S, 3D]
        o_w_l = o_w_ref[l]                                                  # [D, D]
        acc = jnp.zeros((s, d), jnp.float32)
        for h in range(num_heads):                    # static unroll (H small)
            base = h * 3 * hd
            qh = qkv[:, base:base + hd]
            kh = qkv[:, base + hd:base + 2 * hd]
            vh = qkv[:, base + 2 * hd:base + 3 * hd]
            scores = lax.dot_general(qh, kh, (((1,), (1,)), ((), ())),
                                     preferred_element_type=jnp.float32) * inv_sqrt_hd
            # PyTorch quirk: every exactly-zero entry of the scattered score
            # matrix (out-of-band positions, plus any in-band score that is
            # exactly 0.0) becomes -inf before the softmax.  Band + padding
            # are folded into the precomputed additive mask.
            completed = jnp.where(scores == 0.0, neg_inf, scores) + addmask
            m = jnp.max(completed, axis=-1, keepdims=True)
            e = jnp.exp(completed - jnp.where(m == neg_inf, 0.0, m))
            denom = jnp.sum(e, axis=-1, keepdims=True)
            inv = jnp.where(denom > 0.0, pl.reciprocal(denom, approx=True), 0.0)
            attn = e * inv            # fully-masked rows -> exact 0 (torch NaN -> 0)
            head_out = jnp.dot(attn, vh, preferred_element_type=jnp.float32)  # [S, hd]
            # Fold this head's slice of the output projection in directly:
            # concat(head_outs) @ W_o == sum_h head_out_h @ W_o[h*hd:(h+1)*hd, :]
            acc = acc + jnp.dot(head_out, o_w_l[h * hd:(h + 1) * hd, :],
                                preferred_element_type=jnp.float32)
        attn_out = acc + o_b_ref[l]
        # dropout: identity (eval)
        x = _layer_norm(x + attn_out, ln1_g_ref[l], ln1_b_ref[l])

        # ---- PositionWiseFeedForward ----
        h1 = jnp.dot(x, fc1_w_ref[l],
                     preferred_element_type=jnp.float32) + fc1_b_ref[l]
        h1 = _gelu_exact(h1)
        ff = jnp.dot(h1, fc2_w_ref[l],
                     preferred_element_type=jnp.float32) + fc2_b_ref[l]
        # dropout: identity (eval)
        x = _layer_norm(x + ff, ln2_g_ref[l], ln2_b_ref[l])

    # ---- classification MLP on the CLS token ----
    cls = x[0:1, :]                                                    # [1, D]
    hcls = jnp.tanh(jnp.dot(cls, w1_ref[...],
                            preferred_element_type=jnp.float32) + b1_ref[...])
    logit = jnp.sum(hcls * w2_ref[...], axis=-1, keepdims=True)        # [1, 1]
    out_ref[0] = logit


def encoder_forward(params, sentence, padding_mask, *, num_heads, window_size):
    assert window_size % 2 == 0, "window size must be an even number"
    # ---- plain-JAX glue: embedding gather + positional encoding + mask build ----
    emb = jnp.take(params["embedding"], sentence, axis=0)        # [B, S, D]
    b, s, d = emb.shape
    x0 = (emb + params["pe"][None, :s, :]).astype(jnp.float32)
    # self.dropout: identity in eval mode

    ok = (padding_mask != 0)                                     # [B, S]
    row = jnp.arange(s)[:, None]
    col = jnp.arange(s)[None, :]
    band = jnp.abs(row - col) <= (window_size // 2)              # [S, S], grid-invariant
    valid = band[None, :, :] & ok[:, None, :] & ok[:, :, None]
    addmask = jnp.where(valid, 0.0, -jnp.inf).astype(jnp.float32)   # [B, S, S]

    num_layers = params["qkv_w"].shape[0]

    weight_names = ["qkv_w", "qkv_b", "o_w", "o_b", "ln1_g", "ln1_b",
                    "fc1_w", "fc1_b", "fc2_w", "fc2_b", "ln2_g", "ln2_b",
                    "mlp_w1", "mlp_b1", "mlp_w2"]
    weights = [params[n] for n in weight_names]

    def full_spec(arr):
        nd = arr.ndim
        return pl.BlockSpec(arr.shape, lambda i, _nd=nd: (0,) * _nd)

    out = pl.pallas_call(
        functools.partial(_encoder_kernel,
                          num_layers=num_layers, num_heads=num_heads),
        out_shape=jax.ShapeDtypeStruct((b, 1, 1), jnp.float32),
        grid=(b,),
        in_specs=[pl.BlockSpec((1, s, d), lambda i: (i, 0, 0)),
                  pl.BlockSpec((1, s, s), lambda i: (i, 0, 0))]
                 + [full_spec(w) for w in weights],
        out_specs=pl.BlockSpec((1, 1, 1), lambda i: (i, 0, 0)),
        compiler_params=pltpu.CompilerParams(
            dimension_semantics=("parallel",)),        # v7x: batch split across TCs
    )(x0, addmask, *weights)
    return out.reshape(b, 1)


# ----------------------------- parameters (synthetic, deterministic) -----------------------------

def _xavier_uniform(key, shape):
    fan_out, fan_in = shape
    bound = math.sqrt(6.0 / (fan_in + fan_out))
    return jax.random.uniform(key, shape, jnp.float32, -bound, bound)


def _lin_init(key, shape):
    fan_in = shape[1]
    bound = 1.0 / math.sqrt(fan_in)
    return jax.random.uniform(key, shape, jnp.float32, -bound, bound)


def positional_encoding(max_len, d_model):
    position = jnp.arange(max_len, dtype=jnp.float32)[:, None]
    div_term = jnp.exp(jnp.arange(0, d_model, 2, dtype=jnp.float32)
                       * (-math.log(10000.0) / d_model))
    pe = jnp.zeros((max_len, d_model), jnp.float32)
    pe = pe.at[:, 0::2].set(jnp.sin(position * div_term))
    pe = pe.at[:, 1::2].set(jnp.cos(position * div_term))
    return pe


def make_params(key, vocab_size, embed_dim, num_layers, hidden_dim, max_seq_len):
    ks = jax.random.split(key, 3 + num_layers)
    emb = 0.02 * jax.random.normal(ks[0], (vocab_size, embed_dim), jnp.float32)
    emb = emb.at[0].set(0.0)                     # padding_idx=0 row is zero
    pe = positional_encoding(max_seq_len, embed_dim)

    qkv_w, o_w, fc1_w, fc2_w = [], [], [], []
    for l in range(num_layers):
        lk = jax.random.split(ks[1 + l], 4)
        qkv_w.append(_xavier_uniform(lk[0], (3 * embed_dim, embed_dim)).T)  # [D, 3D]
        o_w.append(_xavier_uniform(lk[1], (embed_dim, embed_dim)).T)        # [D, D]
        fc1_w.append(_lin_init(lk[2], (hidden_dim, embed_dim)).T)           # [D, H]
        fc2_w.append(_lin_init(lk[3], (embed_dim, hidden_dim)).T)           # [H, D]
    L = num_layers
    return dict(
        embedding=emb, pe=pe,
        qkv_w=jnp.stack(qkv_w), qkv_b=jnp.zeros((L, 1, 3 * embed_dim), jnp.float32),
        o_w=jnp.stack(o_w),     o_b=jnp.zeros((L, 1, embed_dim), jnp.float32),
        ln1_g=jnp.ones((L, 1, embed_dim), jnp.float32),
        ln1_b=jnp.zeros((L, 1, embed_dim), jnp.float32),
        fc1_w=jnp.stack(fc1_w), fc1_b=jnp.zeros((L, 1, hidden_dim), jnp.float32),
        fc2_w=jnp.stack(fc2_w), fc2_b=jnp.zeros((L, 1, embed_dim), jnp.float32),
        ln2_g=jnp.ones((L, 1, embed_dim), jnp.float32),
        ln2_b=jnp.zeros((L, 1, embed_dim), jnp.float32),
        mlp_w1=_lin_init(ks[1 + L], (hidden_dim, embed_dim)).T,   # [D, H]
        mlp_b1=jnp.zeros((1, hidden_dim), jnp.float32),
        mlp_w2=_lin_init(ks[2 + L], (1, hidden_dim)),             # [1, H] (bias=False)
    )


# ----------------------------- plain-JAX reference (for correctness check) -----------------------------

def encoder_reference(params, sentence, padding_mask, *, num_heads, window_size):
    emb = jnp.take(params["embedding"], sentence, axis=0)
    b, s, d = emb.shape
    hd = d // num_heads
    x = emb + params["pe"][None, :s, :]
    ok = (padding_mask != 0)
    row = jnp.arange(s)[:, None]
    col = jnp.arange(s)[None, :]
    band = jnp.abs(row - col) <= (window_size // 2)
    valid = band[None] & ok[:, None, :] & ok[:, :, None]
    neg_inf = jnp.float32(-jnp.inf)

    def ln(z, g, b_):
        mu = jnp.mean(z, axis=-1, keepdims=True)
        var = jnp.mean((z - mu) ** 2, axis=-1, keepdims=True)
        return (z - mu) * lax.rsqrt(var + 1e-5) * g + b_

    L = params["qkv_w"].shape[0]
    for l in range(L):
        qkv = x @ params["qkv_w"][l] + params["qkv_b"][l]
        qkv = qkv.reshape(b, s, num_heads, 3 * hd).transpose(0, 2, 1, 3)
        q, k, v = jnp.split(qkv, 3, axis=-1)
        scores = jnp.einsum("bhqd,bhkd->bhqk", q, k) / math.sqrt(hd)
        completed = jnp.where(scores == 0.0, neg_inf, scores)
        completed = jnp.where(valid[:, None], completed, neg_inf)
        m = jnp.max(completed, axis=-1, keepdims=True)
        e = jnp.exp(completed - jnp.where(jnp.isfinite(m), m, 0.0))
        den = jnp.sum(e, axis=-1, keepdims=True)
        attn = jnp.where(den > 0.0, e / den, 0.0)
        vals = jnp.einsum("bhqk,bhkd->bhqd", attn, v)
        vals = vals.transpose(0, 2, 1, 3).reshape(b, s, d)
        ao = vals @ params["o_w"][l] + params["o_b"][l]
        x = ln(x + ao, params["ln1_g"][l], params["ln1_b"][l])
        h1 = x @ params["fc1_w"][l] + params["fc1_b"][l]
        h1 = 0.5 * h1 * (1.0 + jax.scipy.special.erf(h1 / math.sqrt(2.0)))
        ff = h1 @ params["fc2_w"][l] + params["fc2_b"][l]
        x = ln(x + ff, params["ln2_g"][l], params["ln2_b"][l])
    cls = x[:, 0, :]
    hcls = jnp.tanh(cls @ params["mlp_w1"] + params["mlp_b1"])
    return hcls @ params["mlp_w2"].T


# ----------------------------- main -----------------------------

if __name__ == "__main__":
    vocab_size = 50
    embed_dim = 32
    num_heads = 4
    num_layers = 2
    hidden_dim = 64
    max_seq_len = 16
    window_size = 4
    B, S = 2, 16

    key = jax.random.PRNGKey(0)
    pkey, skey = jax.random.split(key)
    params = make_params(pkey, vocab_size, embed_dim, num_layers, hidden_dim,
                         max_seq_len)

    sentence = jax.random.randint(skey, (B, S), 1, vocab_size, dtype=jnp.int32)
    padding_mask = jnp.ones((B, S), jnp.int32)
    padding_mask = padding_mask.at[1, 12:].set(0)               # pad tail of 2nd seq
    sentence = jnp.where(padding_mask == 0, 0, sentence).astype(jnp.int32)

    fwd = jax.jit(functools.partial(encoder_forward,
                                    num_heads=num_heads, window_size=window_size))
    logits = jax.block_until_ready(fwd(params, sentence, padding_mask))

    assert logits.shape == (B, 1)
    assert bool(jnp.all(jnp.isfinite(logits)))

    ref = encoder_reference(params, sentence, padding_mask,
                            num_heads=num_heads, window_size=window_size)
    err = float(jnp.max(jnp.abs(logits - ref)))
    assert err < 5e-2, f"kernel/reference mismatch: {err}"

    print("KERNEL_OK")
</pallas_src>

<mosaic_0001>
module attributes {stable_mosaic.version = 11 : i64} {
  func.func @_encoder_kernel(%arg0: i32, %arg1: memref<1x16x32xf32, #tpu.memory_space<vmem>>, %arg2: memref<1x16x16xf32, #tpu.memory_space<vmem>>, %arg3: memref<2x32x96xf32, #tpu.memory_space<vmem>>, %arg4: memref<2x1x96xf32, #tpu.memory_space<vmem>>, %arg5: memref<2x32x32xf32, #tpu.memory_space<vmem>>, %arg6: memref<2x1x32xf32, #tpu.memory_space<vmem>>, %arg7: memref<2x1x32xf32, #tpu.memory_space<vmem>>, %arg8: memref<2x1x32xf32, #tpu.memory_space<vmem>>, %arg9: memref<2x32x64xf32, #tpu.memory_space<vmem>>, %arg10: memref<2x1x64xf32, #tpu.memory_space<vmem>>, %arg11: memref<2x64x32xf32, #tpu.memory_space<vmem>>, %arg12: memref<2x1x32xf32, #tpu.memory_space<vmem>>, %arg13: memref<2x1x32xf32, #tpu.memory_space<vmem>>, %arg14: memref<2x1x32xf32, #tpu.memory_space<vmem>>, %arg15: memref<32x64xf32, #tpu.memory_space<vmem>>, %arg16: memref<1x64xf32, #tpu.memory_space<vmem>>, %arg17: memref<1x64xf32, #tpu.memory_space<vmem>>, %arg18: memref<1x1x1xf32, #tpu.memory_space<vmem>>) attributes {dimension_semantics = [#tpu.dimension_semantics<parallel>], iteration_bounds = array<i64: 2>, scalar_prefetch = 0 : i64, scratch_operands = 0 : i64, tpu.core_type = #tpu.core_type<tc>, window_params = [{transform_indices = @transform_0, window_bounds = array<i64: 1, 16, 32>}, {transform_indices = @transform_1, window_bounds = array<i64: 1, 16, 16>}, {pipeline_mode = #tpu.pipeline_mode<synchronous>, transform_indices = @transform_2, window_bounds = array<i64: 2, 32, 96>}, {pipeline_mode = #tpu.pipeline_mode<synchronous>, transform_indices = @transform_3, window_bounds = array<i64: 2, 1, 96>}, {pipeline_mode = #tpu.pipeline_mode<synchronous>, transform_indices = @transform_4, window_bounds = array<i64: 2, 32, 32>}, {pipeline_mode = #tpu.pipeline_mode<synchronous>, transform_indices = @transform_5, window_bounds = array<i64: 2, 1, 32>}, {pipeline_mode = #tpu.pipeline_mode<synchronous>, transform_indices = @transform_6, window_bounds = array<i64: 2, 1, 32>}, {pipeline_mode = #tpu.pipeline_mode<synchronous>, transform_indices = @transform_7, window_bounds = array<i64: 2, 1, 32>}, {pipeline_mode = #tpu.pipeline_mode<synchronous>, transform_indices = @transform_8, window_bounds = array<i64: 2, 32, 64>}, {pipeline_mode = #tpu.pipeline_mode<synchronous>, transform_indices = @transform_9, window_bounds = array<i64: 2, 1, 64>}, {pipeline_mode = #tpu.pipeline_mode<synchronous>, transform_indices = @transform_10, window_bounds = array<i64: 2, 64, 32>}, {pipeline_mode = #tpu.pipeline_mode<synchronous>, transform_indices = @transform_11, window_bounds = array<i64: 2, 1, 32>}, {pipeline_mode = #tpu.pipeline_mode<synchronous>, transform_indices = @transform_12, window_bounds = array<i64: 2, 1, 32>}, {pipeline_mode = #tpu.pipeline_mode<synchronous>, transform_indices = @transform_13, window_bounds = array<i64: 2, 1, 32>}, {pipeline_mode = #tpu.pipeline_mode<synchronous>, transform_indices = @transform_14, window_bounds = array<i64: 32, 64>}, {pipeline_mode = #tpu.pipeline_mode<synchronous>, transform_indices = @transform_15, window_bounds = array<i64: 1, 64>}, {pipeline_mode = #tpu.pipeline_mode<synchronous>, transform_indices = @transform_16, window_bounds = array<i64: 1, 64>}, {transform_indices = @transform_17, window_bounds = array<i64: 1, 1, 1>}]} {
    %c0 = arith.constant 0 : index
    %c0_0 = arith.constant 0 : index
    %c0_1 = arith.constant 0 : index
    %0 = vector.load %arg1[%c0, %c0_0, %c0_1] : memref<1x16x32xf32, #tpu.memory_space<vmem>>, vector<1x16x32xf32>
    %1 = vector.shape_cast %0 : vector<1x16x32xf32> to vector<16x32xf32>
    %c0_2 = arith.constant 0 : index
    %c0_3 = arith.constant 0 : index
    %c0_4 = arith.constant 0 : index
    %2 = vector.load %arg2[%c0_2, %c0_3, %c0_4] : memref<1x16x16xf32, #tpu.memory_space<vmem>>, vector<1x16x16xf32>
    %3 = vector.shape_cast %2 : vector<1x16x16xf32> to vector<16x16xf32>
    %c0_5 = arith.constant 0 : index
    %c0_6 = arith.constant 0 : index
    %c0_7 = arith.constant 0 : index
    %4 = vector.load %arg3[%c0_5, %c0_6, %c0_7] : memref<2x32x96xf32, #tpu.memory_space<vmem>>, vector<1x32x96xf32>
    %5 = vector.shape_cast %4 : vector<1x32x96xf32> to vector<32x96xf32>
    %cst = arith.constant dense<0.000000e+00> : vector<16x96xf32>
    %6 = tpu.matmul %1, %5, %cst {dimension_numbers = #tpu.dot_dimension_numbers<[1], [0], [0], [1], [0, 0, 1, 1], [], []>} : vector<16x32xf32>, vector<32x96xf32>, vector<16x96xf32> -> vector<16x96xf32>
    %c0_8 = arith.constant 0 : index
    %c0_9 = arith.constant 0 : index
    %c0_10 = arith.constant 0 : index
    %7 = vector.load %arg4[%c0_8, %c0_9, %c0_10] : memref<2x1x96xf32, #tpu.memory_space<vmem>>, vector<1x1x96xf32>
    %8 = vector.shape_cast %7 : vector<1x1x96xf32> to vector<1x96xf32>
    %9 = vector.broadcast %8 : vector<1x96xf32> to vector<16x96xf32>
    %10 = arith.addf %6, %9 : vector<16x96xf32>
    %c0_11 = arith.constant 0 : index
    %c0_12 = arith.constant 0 : index
    %c0_13 = arith.constant 0 : index
    %11 = vector.load %arg5[%c0_11, %c0_12, %c0_13] : memref<2x32x32xf32, #tpu.memory_space<vmem>>, vector<1x32x32xf32>
    %12 = vector.shape_cast %11 : vector<1x32x32xf32> to vector<32x32xf32>
    %cst_14 = arith.constant 0.000000e+00 : f32
    %13 = vector.broadcast %cst_14 : f32 to vector<16x32xf32>
    %14 = vector.extract_strided_slice %10 {offsets = [0, 0], sizes = [16, 8], strides = [1, 1]} : vector<16x96xf32> to vector<16x8xf32>
    %15 = vector.extract_strided_slice %10 {offsets = [0, 8], sizes = [16, 8], strides = [1, 1]} : vector<16x96xf32> to vector<16x8xf32>
    %16 = vector.extract_strided_slice %10 {offsets = [0, 16], sizes = [16, 8], strides = [1, 1]} : vector<16x96xf32> to vector<16x8xf32>
    %cst_15 = arith.constant dense<0.000000e+00> : vector<16x16xf32>
    %17 = tpu.matmul %14, %15, %cst_15 {dimension_numbers = #tpu.dot_dimension_numbers<[1], [1], [0], [0], [0, 0, 1, 0], [], []>} : vector<16x8xf32>, vector<16x8xf32>, vector<16x16xf32> -> vector<16x16xf32>
    %cst_16 = arith.constant 0.353553385 : f32
    %18 = vector.broadcast %cst_16 : f32 to vector<16x16xf32>
    %19 = arith.mulf %17, %18 : vector<16x16xf32>
    %cst_17 = arith.constant 0.000000e+00 : f32
    %20 = vector.broadcast %cst_17 : f32 to vector<16x16xf32>
    %21 = arith.cmpf oeq, %19, %20 : vector<16x16xf32>
    %cst_18 = arith.constant 0xFF800000 : f32
    %22 = vector.broadcast %cst_18 : f32 to vector<16x16xf32>
    %23 = arith.select %21, %22, %19 : vector<16x16xi1>, vector<16x16xf32>
    %24 = arith.addf %23, %3 : vector<16x16xf32>
    %cst_19 = arith.constant dense<0xFF800000> : vector<16xf32>
    %25 = vector.multi_reduction <maximumf>, %24, %cst_19 [1] : vector<16x16xf32> to vector<16xf32>
    %26 = vector.shape_cast %25 : vector<16xf32> to vector<16x1xf32>
    %cst_20 = arith.constant 0xFF800000 : f32
    %27 = vector.broadcast %cst_20 : f32 to vector<16x1xf32>
    %28 = arith.cmpf oeq, %26, %27 : vector<16x1xf32>
    %cst_21 = arith.constant 0.000000e+00 : f32
    %29 = vector.broadcast %cst_21 : f32 to vector<16x1xf32>
    %30 = arith.select %28, %29, %26 : vector<16x1xi1>, vector<16x1xf32>
    %31 = vector.broadcast %30 : vector<16x1xf32> to vector<16x16xf32>
    %32 = arith.subf %24, %31 : vector<16x16xf32>
    %33 = math.exp %32 : vector<16x16xf32>
    %cst_22 = arith.constant dense<0.000000e+00> : vector<16xf32>
    %34 = vector.multi_reduction <add>, %33, %cst_22 [1] : vector<16x16xf32> to vector<16xf32>
    %35 = vector.shape_cast %34 : vector<16xf32> to vector<16x1xf32>
    %cst_23 = arith.constant 0.000000e+00 : f32
    %36 = vector.broadcast %cst_23 : f32 to vector<16x1xf32>
    %37 = arith.cmpf ogt, %35, %36 : vector<16x1xf32>
    %38 = tpu.reciprocal %35 {approx = true} : vector<16x1xf32> -> vector<16x1xf32>
    %cst_24 = arith.constant 0.000000e+00 : f32
    %39 = vector.broadcast %cst_24 : f32 to vector<16x1xf32>
    %40 = arith.select %37, %38, %39 : vector<16x1xi1>, vector<16x1xf32>
    %41 = vector.broadcast %40 : vector<16x1xf32> to vector<16x16xf32>
    %42 = arith.mulf %33, %41 : vector<16x16xf32>
    %cst_25 = arith.constant dense<0.000000e+00> : vector<16x8xf32>
    %43 = tpu.matmul %42, %16, %cst_25 {dimension_numbers = #tpu.dot_dimension_numbers<[1], [0], [0], [1], [0, 0, 1, 1], [], []>} : vector<16x16xf32>, vector<16x8xf32>, vector<16x8xf32> -> vector<16x8xf32>
    %44 = vector.extract_strided_slice %12 {offsets = [0, 0], sizes = [8, 32], strides = [1, 1]} : vector<32x32xf32> to vector<8x32xf32>
    %cst_26 = arith.constant dense<0.000000e+00> : vector<16x32xf32>
    %45 = tpu.matmul %43, %44, %cst_26 {dimension_numbers = #tpu.dot_dimension_numbers<[1], [0], [0], [1], [0, 0, 1, 1], [], []>} : vector<16x8xf32>, vector<8x32xf32>, vector<16x32xf32> -> vector<16x32xf32>
    %46 = arith.addf %13, %45 : vector<16x32xf32>
    %47 = vector.extract_strided_slice %10 {offsets = [0, 24], sizes = [16, 8], strides = [1, 1]} : vector<16x96xf32> to vector<16x8xf32>
    %48 = vector.extract_strided_slice %10 {offsets = [0, 32], sizes = [16, 8], strides = [1, 1]} : vector<16x96xf32> to vector<16x8xf32>
    %49 = vector.extract_strided_slice %10 {offsets = [0, 40], sizes = [16, 8], strides = [1, 1]} : vector<16x96xf32> to vector<16x8xf32>
    %cst_27 = arith.constant dense<0.000000e+00> : vector<16x16xf32>
    %50 = tpu.matmul %47, %48, %cst_27 {dimension_numbers = #tpu.dot_dimension_numbers<[1], [1], [0], [0], [0, 0, 1, 0], [], []>} : vector<16x8xf32>, vector<16x8xf32>, vector<16x16xf32> -> vector<16x16xf32>
    %cst_28 = arith.constant 0.353553385 : f32
    %51 = vector.broadcast %cst_28 : f32 to vector<16x16xf32>
    %52 = arith.mulf %50, %51 : vector<16x16xf32>
    %cst_29 = arith.constant 0.000000e+00 : f32
    %53 = vector.broadcast %cst_29 : f32 to vector<16x16xf32>
    %54 = arith.cmpf oeq, %52, %53 : vector<16x16xf32>
    %cst_30 = arith.constant 0xFF800000 : f32
    %55 = vector.broadcast %cst_30 : f32 to vector<16x16xf32>
    %56 = arith.select %54, %55, %52 : vector<16x16xi1>, vector<16x16xf32>
    %57 = arith.addf %56, %3 : vector<16x16xf32>
    %cst_31 = arith.constant dense<0xFF800000> : vector<16xf32>
    %58 = vector.multi_reduction <maximumf>, %57, %cst_31 [1] : vector<16x16xf32> to vector<16xf32>
    %59 = vector.shape_cast %58 : vector<16xf32> to vector<16x1xf32>
    %cst_32 = arith.constant 0xFF800000 : f32
    %60 = vector.broadcast %cst_32 : f32 to vector<16x1xf32>
    %61 = arith.cmpf oeq, %59, %60 : vector<16x1xf32>
    %cst_33 = arith.constant 0.000000e+00 : f32
    %62 = vector.broadcast %cst_33 : f32 to vector<16x1xf32>
    %63 = arith.select %61, %62, %59 : vector<16x1xi1>, vector<16x1xf32>
    %64 = vector.broadcast %63 : vector<16x1xf32> to vector<16x16xf32>
    %65 = arith.subf %57, %64 : vector<16x16xf32>
    %66 = math.exp %65 : vector<16x16xf32>
    %cst_34 = arith.constant dense<0.000000e+00> : vector<16xf32>
    %67 = vector.multi_reduction <add>, %66, %cst_34 [1] : vector<16x16xf32> to vector<16xf32>
    %68 = vector.shape_cast %67 : vector<16xf32> to vector<16x1xf32>
    %cst_35 = arith.constant 0.000000e+00 : f32
    %69 = vector.broadcast %cst_35 : f32 to vector<16x1xf32>
    %70 = arith.cmpf ogt, %68, %69 : vector<16x1xf32>
    %71 = tpu.reciprocal %68 {approx = true} : vector<16x1xf32> -> vector<16x1xf32>
    %cst_36 = arith.constant 0.000000e+00 : f32
    %72 = vector.broadcast %cst_36 : f32 to vector<16x1xf32>
    %73 = arith.select %70, %71, %72 : vector<16x1xi1>, vector<16x1xf32>
    %74 = vector.broadcast %73 : vector<16x1xf32> to vector<16x16xf32>
    %75 = arith.mulf %66, %74 : vector<16x16xf32>
    %cst_37 = arith.constant dense<0.000000e+00> : vector<16x8xf32>
    %76 = tpu.matmul %75, %49, %cst_37 {dimension_numbers = #tpu.dot_dimension_numbers<[1], [0], [0], [1], [0, 0, 1, 1], [], []>} : vector<16x16xf32>, vector<16x8xf32>, vector<16x8xf32> -> vector<16x8xf32>
    %77 = vector.extract_strided_slice %12 {offsets = [8, 0], sizes = [8, 32], strides = [1, 1]} : vector<32x32xf32> to vector<8x32xf32>
    %cst_38 = arith.constant dense<0.000000e+00> : vector<16x32xf32>
    %78 = tpu.matmul %76, %77, %cst_38 {dimension_numbers = #tpu.dot_dimension_numbers<[1], [0], [0], [1], [0, 0, 1, 1], [], []>} : vector<16x8xf32>, vector<8x32xf32>, vector<16x32xf32> -> vector<16x32xf32>
    %79 = arith.addf %46, %78 : vector<16x32xf32>
    %80 = vector.extract_strided_slice %10 {offsets = [0, 48], sizes = [16, 8], strides = [1, 1]} : vector<16x96xf32> to vector<16x8xf32>
    %81 = vector.extract_strided_slice %10 {offsets = [0, 56], sizes = [16, 8], strides = [1, 1]} : vector<16x96xf32> to vector<16x8xf32>
    %82 = vector.extract_strided_slice %10 {offsets = [0, 64], sizes = [16, 8], strides = [1, 1]} : vector<16x96xf32> to vector<16x8xf32>
    %cst_39 = arith.constant dense<0.000000e+00> : vector<16x16xf32>
    %83 = tpu.matmul %80, %81, %cst_39 {dimension_numbers = #tpu.dot_dimension_numbers<[1], [1], [0], [0], [0, 0, 1, 0], [], []>} : vector<16x8xf32>, vector<16x8xf32>, vector<16x16xf32> -> vector<16x16xf32>
    %cst_40 = arith.constant 0.353553385 : f32
    %84 = vector.broadcast %cst_40 : f32 to vector<16x16xf32>
    %85 = arith.mulf %83, %84 : vector<16x16xf32>
    %cst_41 = arith.constant 0.000000e+00 : f32
    %86 = vector.broadcast %cst_41 : f32 to vector<16x16xf32>
    %87 = arith.cmpf oeq, %85, %86 : vector<16x16xf32>
    %cst_42 = arith.constant 0xFF800000 : f32
    %88 = vector.broadcast %cst_42 : f32 to vector<16x16xf32>
    %89 = arith.select %87, %88, %85 : vector<16x16xi1>, vector<16x16xf32>
    %90 = arith.addf %89, %3 : vector<16x16xf32>
    %cst_43 = arith.constant dense<0xFF800000> : vector<16xf32>
    %91 = vector.multi_reduction <maximumf>, %90, %cst_43 [1] : vector<16x16xf32> to vector<16xf32>
    %92 = vector.shape_cast %91 : vector<16xf32> to vector<16x1xf32>
    %cst_44 = arith.constant 0xFF800000 : f32
    %93 = vector.broadcast %cst_44 : f32 to vector<16x1xf32>
    %94 = arith.cmpf oeq, %92, %93 : vector<16x1xf32>
    %cst_45 = arith.constant 0.000000e+00 : f32
    %95 = vector.broadcast %cst_45 : f32 to vector<16x1xf32>
    %96 = arith.select %94, %95, %92 : vector<16x1xi1>, vector<16x1xf32>
    %97 = vector.broadcast %96 : vector<16x1xf32> to vector<16x16xf32>
    %98 = arith.subf %90, %97 : vector<16x16xf32>
    %99 = math.exp %98 : vector<16x16xf32>
    %cst_46 = arith.constant dense<0.000000e+00> : vector<16xf32>
    %100 = vector.multi_reduction <add>, %99, %cst_46 [1] : vector<16x16xf32> to vector<16xf32>
    %101 = vector.shape_cast %100 : vector<16xf32> to vector<16x1xf32>
    %cst_47 = arith.constant 0.000000e+00 : f32
    %102 = vector.broadcast %cst_47 : f32 to vector<16x1xf32>
    %103 = arith.cmpf ogt, %101, %102 : vector<16x1xf32>
    %104 = tpu.reciprocal %101 {approx = true} : vector<16x1xf32> -> vector<16x1xf32>
    %cst_48 = arith.constant 0.000000e+00 : f32
    %105 = vector.broadcast %cst_48 : f32 to vector<16x1xf32>
    %106 = arith.select %103, %104, %105 : vector<16x1xi1>, vector<16x1xf32>
    %107 = vector.broadcast %106 : vector<16x1xf32> to vector<16x16xf32>
    %108 = arith.mulf %99, %107 : vector<16x16xf32>
    %cst_49 = arith.constant dense<0.000000e+00> : vector<16x8xf32>
    %109 = tpu.matmul %108, %82, %cst_49 {dimension_numbers = #tpu.dot_dimension_numbers<[1], [0], [0], [1], [0, 0, 1, 1], [], []>} : vector<16x16xf32>, vector<16x8xf32>, vector<16x8xf32> -> vector<16x8xf32>
    %110 = vector.extract_strided_slice %12 {offsets = [16, 0], sizes = [8, 32], strides = [1, 1]} : vector<32x32xf32> to vector<8x32xf32>
    %cst_50 = arith.constant dense<0.000000e+00> : vector<16x32xf32>
    %111 = tpu.matmul %109, %110, %cst_50 {dimension_numbers = #tpu.dot_dimension_numbers<[1], [0], [0], [1], [0, 0, 1, 1], [], []>} : vector<16x8xf32>, vector<8x32xf32>, vector<16x32xf32> -> vector<16x32xf32>
    %112 = arith.addf %79, %111 : vector<16x32xf32>
    %113 = vector.extract_strided_slice %10 {offsets = [0, 72], sizes = [16, 8], strides = [1, 1]} : vector<16x96xf32> to vector<16x8xf32>
    %114 = vector.extract_strided_slice %10 {offsets = [0, 80], sizes = [16, 8], strides = [1, 1]} : vector<16x96xf32> to vector<16x8xf32>
    %115 = vector.extract_strided_slice %10 {offsets = [0, 88], sizes = [16, 8], strides = [1, 1]} : vector<16x96xf32> to vector<16x8xf32>
    %cst_51 = arith.constant dense<0.000000e+00> : vector<16x16xf32>
    %116 = tpu.matmul %113, %114, %cst_51 {dimension_numbers = #tpu.dot_dimension_numbers<[1], [1], [0], [0], [0, 0, 1, 0], [], []>} : vector<16x8xf32>, vector<16x8xf32>, vector<16x16xf32> -> vector<16x16xf32>
    %cst_52 = arith.constant 0.353553385 : f32
    %117 = vector.broadcast %cst_52 : f32 to vector<16x16xf32>
    %118 = arith.mulf %116, %117 : vector<16x16xf32>
    %cst_53 = arith.constant 0.000000e+00 : f32
    %119 = vector.broadcast %cst_53 : f32 to vector<16x16xf32>
    %120 = arith.cmpf oeq, %118, %119 : vector<16x16xf32>
    %cst_54 = arith.constant 0xFF800000 : f32
    %121 = vector.broadcast %cst_54 : f32 to vector<16x16xf32>
    %122 = arith.select %120, %121, %118 : vector<16x16xi1>, vector<16x16xf32>
    %123 = arith.addf %122, %3 : vector<16x16xf32>
    %cst_55 = arith.constant dense<0xFF800000> : vector<16xf32>
    %124 = vector.multi_reduction <maximumf>, %123, %cst_55 [1] : vector<16x16xf32> to vector<16xf32>
    %125 = vector.shape_cast %124 : vector<16xf32> to vector<16x1xf32>
    %cst_56 = arith.constant 0xFF800000 : f32
    %126 = vector.broadcast %cst_56 : f32 to vector<16x1xf32>
    %127 = arith.cmpf oeq, %125, %126 : vector<16x1xf32>
    %cst_57 = arith.constant 0.000000e+00 : f32
    %128 = vector.broadcast %cst_57 : f32 to vector<16x1xf32>
    %129 = arith.select %127, %128, %125 : vector<16x1xi1>, vector<16x1xf32>
    %130 = vector.broadcast %129 : vector<16x1xf32> to vector<16x16xf32>
    %131 = arith.subf %123, %130 : vector<16x16xf32>
    %132 = math.exp %131 : vector<16x16xf32>
    %cst_58 = arith.constant dense<0.000000e+00> : vector<16xf32>
    %133 = vector.multi_reduction <add>, %132, %cst_58 [1] : vector<16x16xf32> to vector<16xf32>
    %134 = vector.shape_cast %133 : vector<16xf32> to vector<16x1xf32>
    %cst_59 = arith.constant 0.000000e+00 : f32
    %135 = vector.broadcast %cst_59 : f32 to vector<16x1xf32>
    %136 = arith.cmpf ogt, %134, %135 : vector<16x1xf32>
    %137 = tpu.reciprocal %134 {approx = true} : vector<16x1xf32> -> vector<16x1xf32>
    %cst_60 = arith.constant 0.000000e+00 : f32
    %138 = vector.broadcast %cst_60 : f32 to vector<16x1xf32>
    %139 = arith.select %136, %137, %138 : vector<16x1xi1>, vector<16x1xf32>
    %140 = vector.broadcast %139 : vector<16x1xf32> to vector<16x16xf32>
    %141 = arith.mulf %132, %140 : vector<16x16xf32>
    %cst_61 = arith.constant dense<0.000000e+00> : vector<16x8xf32>
    %142 = tpu.matmul %141, %115, %cst_61 {dimension_numbers = #tpu.dot_dimension_numbers<[1], [0], [0], [1], [0, 0, 1, 1], [], []>} : vector<16x16xf32>, vector<16x8xf32>, vector<16x8xf32> -> vector<16x8xf32>
    %143 = vector.extract_strided_slice %12 {offsets = [24, 0], sizes = [8, 32], strides = [1, 1]} : vector<32x32xf32> to vector<8x32xf32>
    %cst_62 = arith.constant dense<0.000000e+00> : vector<16x32xf32>
    %144 = tpu.matmul %142, %143, %cst_62 {dimension_numbers = #tpu.dot_dimension_numbers<[1], [0], [0], [1], [0, 0, 1, 1], [], []>} : vector<16x8xf32>, vector<8x32xf32>, vector<16x32xf32> -> vector<16x32xf32>
    %145 = arith.addf %112, %144 : vector<16x32xf32>
    %c0_63 = arith.constant 0 : index
    %c0_64 = arith.constant 0 : index
    %c0_65 = arith.constant 0 : index
    %146 = vector.load %arg6[%c0_63, %c0_64, %c0_65] : memref<2x1x32xf32, #tpu.memory_space<vmem>>, vector<1x1x32xf32>
    %147 = vector.shape_cast %146 : vector<1x1x32xf32> to vector<1x32xf32>
    %148 = vector.broadcast %147 : vector<1x32xf32> to vector<16x32xf32>
    %149 = arith.addf %145, %148 : vector<16x32xf32>
    %150 = arith.addf %1, %149 : vector<16x32xf32>
    %c0_66 = arith.constant 0 : index
    %c0_67 = arith.constant 0 : index
    %c0_68 = arith.constant 0 : index
    %151 = vector.load %arg7[%c0_66, %c0_67, %c0_68] : memref<2x1x32xf32, #tpu.memory_space<vmem>>, vector<1x1x32xf32>
    %152 = vector.shape_cast %151 : vector<1x1x32xf32> to vector<1x32xf32>
    %c0_69 = arith.constant 0 : index
    %c0_70 = arith.constant 0 : index
    %c0_71 = arith.constant 0 : index
    %153 = vector.load %arg8[%c0_69, %c0_70, %c0_71] : memref<2x1x32xf32, #tpu.memory_space<vmem>>, vector<1x1x32xf32>
    %154 = vector.shape_cast %153 : vector<1x1x32xf32> to vector<1x32xf32>
    %cst_72 = arith.constant dense<0.000000e+00> : vector<16xf32>
    %155 = vector.multi_reduction <add>, %150, %cst_72 [1] : vector<16x32xf32> to vector<16xf32>
    %156 = vector.shape_cast %155 : vector<16xf32> to vector<16x1xf32>
    %cst_73 = arith.constant 3.200000e+01 : f32
    %157 = vector.broadcast %cst_73 : f32 to vector<16x1xf32>
    %158 = arith.divf %156, %157 : vector<16x1xf32>
    %159 = vector.broadcast %158 : vector<16x1xf32> to vector<16x32xf32>
    %160 = arith.subf %150, %159 : vector<16x32xf32>
    %161 = arith.mulf %160, %160 : vector<16x32xf32>
    %cst_74 = arith.constant dense<0.000000e+00> : vector<16xf32>
    %162 = vector.multi_reduction <add>, %161, %cst_74 [1] : vector<16x32xf32> to vector<16xf32>
    %163 = vector.shape_cast %162 : vector<16xf32> to vector<16x1xf32>
    %cst_75 = arith.constant 3.200000e+01 : f32
    %164 = vector.broadcast %cst_75 : f32 to vector<16x1xf32>
    %165 = arith.divf %163, %164 : vector<16x1xf32>
    %166 = vector.broadcast %158 : vector<16x1xf32> to vector<16x32xf32>
    %167 = arith.subf %150, %166 : vector<16x32xf32>
    %cst_76 = arith.constant 9.99999974E-6 : f32
    %168 = vector.broadcast %cst_76 : f32 to vector<16x1xf32>
    %169 = arith.addf %165, %168 : vector<16x1xf32>
    %170 = math.rsqrt %169 : vector<16x1xf32>
    %171 = vector.broadcast %170 : vector<16x1xf32> to vector<16x32xf32>
    %172 = arith.mulf %167, %171 : vector<16x32xf32>
    %173 = vector.broadcast %152 : vector<1x32xf32> to vector<16x32xf32>
    %174 = arith.mulf %172, %173 : vector<16x32xf32>
    %175 = vector.broadcast %154 : vector<1x32xf32> to vector<16x32xf32>
    %176 = arith.addf %174, %175 : vector<16x32xf32>
    %c0_77 = arith.constant 0 : index
    %c0_78 = arith.constant 0 : index
    %c0_79 = arith.constant 0 : index
    %177 = vector.load %arg9[%c0_77, %c0_78, %c0_79] : memref<2x32x64xf32, #tpu.memory_space<vmem>>, vector<1x32x64xf32>
    %178 = vector.shape_cast %177 : vector<1x32x64xf32> to vector<32x64xf32>
    %cst_80 = arith.constant dense<0.000000e+00> : vector<16x64xf32>
    %179 = tpu.matmul %176, %178, %cst_80 {dimension_numbers = #tpu.dot_dimension_numbers<[1], [0], [0], [1], [0, 0, 1, 1], [], []>} : vector<16x32xf32>, vector<32x64xf32>, vector<16x64xf32> -> vector<16x64xf32>
    %c0_81 = arith.constant 0 : index
    %c0_82 = arith.constant 0 : index
    %c0_83 = arith.constant 0 : index
    %180 = vector.load %arg10[%c0_81, %c0_82, %c0_83] : memref<2x1x64xf32, #tpu.memory_space<vmem>>, vector<1x1x64xf32>
    %181 = vector.shape_cast %180 : vector<1x1x64xf32> to vector<1x64xf32>
    %182 = vector.broadcast %181 : vector<1x64xf32> to vector<16x64xf32>
    %183 = arith.addf %179, %182 : vector<16x64xf32>
    %cst_84 = arith.constant 5.000000e-01 : f32
    %184 = vector.broadcast %cst_84 : f32 to vector<16x64xf32>
    %185 = arith.mulf %184, %183 : vector<16x64xf32>
    %cst_85 = arith.constant 0.707106769 : f32
    %186 = vector.broadcast %cst_85 : f32 to vector<16x64xf32>
    %187 = arith.mulf %183, %186 : vector<16x64xf32>
    %188 = math.erf %187 : vector<16x64xf32>
    %cst_86 = arith.constant 1.000000e+00 : f32
    %189 = vector.broadcast %cst_86 : f32 to vector<16x64xf32>
    %190 = arith.addf %189, %188 : vector<16x64xf32>
    %191 = arith.mulf %185, %190 : vector<16x64xf32>
    %c0_87 = arith.constant 0 : index
    %c0_88 = arith.constant 0 : index
    %c0_89 = arith.constant 0 : index
    %192 = vector.load %arg11[%c0_87, %c0_88, %c0_89] : memref<2x64x32xf32, #tpu.memory_space<vmem>>, vector<1x64x32xf32>
    %193 = vector.shape_cast %192 : vector<1x64x32xf32> to vector<64x32xf32>
    %cst_90 = arith.constant dense<0.000000e+00> : vector<16x32xf32>
    %194 = tpu.matmul %191, %193, %cst_90 {dimension_numbers = #tpu.dot_dimension_numbers<[1], [0], [0], [1], [0, 0, 1, 1], [], []>} : vector<16x64xf32>, vector<64x32xf32>, vector<16x32xf32> -> vector<16x32xf32>
    %c0_91 = arith.constant 0 : index
    %c0_92 = arith.constant 0 : index
    %c0_93 = arith.constant 0 : index
    %195 = vector.load %arg12[%c0_91, %c0_92, %c0_93] : memref<2x1x32xf32, #tpu.memory_space<vmem>>, vector<1x1x32xf32>
    %196 = vector.shape_cast %195 : vector<1x1x32xf32> to vector<1x32xf32>
    %197 = vector.broadcast %196 : vector<1x32xf32> to vector<16x32xf32>
    %198 = arith.addf %194, %197 : vector<16x32xf32>
    %199 = arith.addf %176, %198 : vector<16x32xf32>
    %c0_94 = arith.constant 0 : index
    %c0_95 = arith.constant 0 : index
    %c0_96 = arith.constant 0 : index
    %200 = vector.load %arg13[%c0_94, %c0_95, %c0_96] : memref<2x1x32xf32, #tpu.memory_space<vmem>>, vector<1x1x32xf32>
    %201 = vector.shape_cast %200 : vector<1x1x32xf32> to vector<1x32xf32>
    %c0_97 = arith.constant 0 : index
    %c0_98 = arith.constant 0 : index
    %c0_99 = arith.constant 0 : index
    %202 = vector.load %arg14[%c0_97, %c0_98, %c0_99] : memref<2x1x32xf32, #tpu.memory_space<vmem>>, vector<1x1x32xf32>
    %203 = vector.shape_cast %202 : vector<1x1x32xf32> to vector<1x32xf32>
    %cst_100 = arith.constant dense<0.000000e+00> : vector<16xf32>
    %204 = vector.multi_reduction <add>, %199, %cst_100 [1] : vector<16x32xf32> to vector<16xf32>
    %205 = vector.shape_cast %204 : vector<16xf32> to vector<16x1xf32>
    %cst_101 = arith.constant 3.200000e+01 : f32
    %206 = vector.broadcast %cst_101 : f32 to vector<16x1xf32>
    %207 = arith.divf %205, %206 : vector<16x1xf32>
    %208 = vector.broadcast %207 : vector<16x1xf32> to vector<16x32xf32>
    %209 = arith.subf %199, %208 : vector<16x32xf32>
    %210 = arith.mulf %209, %209 : vector<16x32xf32>
    %cst_102 = arith.constant dense<0.000000e+00> : vector<16xf32>
    %211 = vector.multi_reduction <add>, %210, %cst_102 [1] : vector<16x32xf32> to vector<16xf32>
    %212 = vector.shape_cast %211 : vector<16xf32> to vector<16x1xf32>
    %cst_103 = arith.constant 3.200000e+01 : f32
    %213 = vector.broadcast %cst_103 : f32 to vector<16x1xf32>
    %214 = arith.divf %212, %213 : vector<16x1xf32>
    %215 = vector.broadcast %207 : vector<16x1xf32> to vector<16x32xf32>
    %216 = arith.subf %199, %215 : vector<16x32xf32>
    %cst_104 = arith.constant 9.99999974E-6 : f32
    %217 = vector.broadcast %cst_104 : f32 to vector<16x1xf32>
    %218 = arith.addf %214, %217 : vector<16x1xf32>
    %219 = math.rsqrt %218 : vector<16x1xf32>
    %220 = vector.broadcast %219 : vector<16x1xf32> to vector<16x32xf32>
    %221 = arith.mulf %216, %220 : vector<16x32xf32>
    %222 = vector.broadcast %201 : vector<1x32xf32> to vector<16x32xf32>
    %223 = arith.mulf %221, %222 : vector<16x32xf32>
    %224 = vector.broadcast %203 : vector<1x32xf32> to vector<16x32xf32>
    %225 = arith.addf %223, %224 : vector<16x32xf32>
    %c1 = arith.constant 1 : index
    %c0_105 = arith.constant 0 : index
    %c0_106 = arith.constant 0 : index
    %226 = vector.load %arg3[%c1, %c0_105, %c0_106] : memref<2x32x96xf32, #tpu.memory_space<vmem>>, vector<1x32x96xf32>
    %227 = vector.shape_cast %226 : vector<1x32x96xf32> to vector<32x96xf32>
    %cst_107 = arith.constant dense<0.000000e+00> : vector<16x96xf32>
    %228 = tpu.matmul %225, %227, %cst_107 {dimension_numbers = #tpu.dot_dimension_numbers<[1], [0], [0], [1], [0, 0, 1, 1], [], []>} : vector<16x32xf32>, vector<32x96xf32>, vector<16x96xf32> -> vector<16x96xf32>
    %c1_108 = arith.constant 1 : index
    %c0_109 = arith.constant 0 : index
    %c0_110 = arith.constant 0 : index
    %229 = vector.load %arg4[%c1_108, %c0_109, %c0_110] : memref<2x1x96xf32, #tpu.memory_space<vmem>>, vector<1x1x96xf32>
    %230 = vector.shape_cast %229 : vector<1x1x96xf32> to vector<1x96xf32>
    %231 = vector.broadcast %230 : vector<1x96xf32> to vector<16x96xf32>
    %232 = arith.addf %228, %231 : vector<16x96xf32>
    %c1_111 = arith.constant 1 : index
    %c0_112 = arith.constant 0 : index
    %c0_113 = arith.constant 0 : index
    %233 = vector.load %arg5[%c1_111, %c0_112, %c0_113] : memref<2x32x32xf32, #tpu.memory_space<vmem>>, vector<1x32x32xf32>
    %234 = vector.shape_cast %233 : vector<1x32x32xf32> to vector<32x32xf32>
    %cst_114 = arith.constant 0.000000e+00 : f32
    %235 = vector.broadcast %cst_114 : f32 to vector<16x32xf32>
    %236 = vector.extract_strided_slice %232 {offsets = [0, 0], sizes = [16, 8], strides = [1, 1]} : vector<16x96xf32> to vector<16x8xf32>
    %237 = vector.extract_strided_slice %232 {offsets = [0, 8], sizes = [16, 8], strides = [1, 1]} : vector<16x96xf32> to vector<16x8xf32>
    %238 = vector.extract_strided_slice %232 {offsets = [0, 16], sizes = [16, 8], strides = [1, 1]} : vector<16x96xf32> to vector<16x8xf32>
    %cst_115 = arith.constant dense<0.000000e+00> : vector<16x16xf32>
    %239 = tpu.matmul %236, %237, %cst_115 {dimension_numbers = #tpu.dot_dimension_numbers<[1], [1], [0], [0], [0, 0, 1, 0], [], []>} : vector<16x8xf32>, vector<16x8xf32>, vector<16x16xf32> -> vector<16x16xf32>
    %cst_116 = arith.constant 0.353553385 : f32
    %240 = vector.broadcast %cst_116 : f32 to vector<16x16xf32>
    %241 = arith.mulf %239, %240 : vector<16x16xf32>
    %cst_117 = arith.constant 0.000000e+00 : f32
    %242 = vector.broadcast %cst_117 : f32 to vector<16x16xf32>
    %243 = arith.cmpf oeq, %241, %242 : vector<16x16xf32>
    %cst_118 = arith.constant 0xFF800000 : f32
    %244 = vector.broadcast %cst_118 : f32 to vector<16x16xf32>
    %245 = arith.select %243, %244, %241 : vector<16x16xi1>, vector<16x16xf32>
    %246 = arith.addf %245, %3 : vector<16x16xf32>
    %cst_119 = arith.constant dense<0xFF800000> : vector<16xf32>
    %247 = vector.multi_reduction <maximumf>, %246, %cst_119 [1] : vector<16x16xf32> to vector<16xf32>
    %248 = vector.shape_cast %247 : vector<16xf32> to vector<16x1xf32>
    %cst_120 = arith.constant 0xFF800000 : f32
    %249 = vector.broadcast %cst_120 : f32 to vector<16x1xf32>
    %250 = arith.cmpf oeq, %248, %249 : vector<16x1xf32>
    %cst_121 = arith.constant 0.000000e+00 : f32
    %251 = vector.broadcast %cst_121 : f32 to vector<16x1xf32>
    %252 = arith.select %250, %251, %248 : vector<16x1xi1>, vector<16x1xf32>
    %253 = vector.broadcast %252 : vector<16x1xf32> to vector<16x16xf32>
    %254 = arith.subf %246, %253 : vector<16x16xf32>
    %255 = math.exp %254 : vector<16x16xf32>
    %cst_122 = arith.constant dense<0.000000e+00> : vector<16xf32>
    %256 = vector.multi_reduction <add>, %255, %cst_122 [1] : vector<16x16xf32> to vector<16xf32>
    %257 = vector.shape_cast %256 : vector<16xf32> to vector<16x1xf32>
    %cst_123 = arith.constant 0.000000e+00 : f32
    %258 = vector.broadcast %cst_123 : f32 to vector<16x1xf32>
    %259 = arith.cmpf ogt, %257, %258 : vector<16x1xf32>
    %260 = tpu.reciprocal %257 {approx = true} : vector<16x1xf32> -> vector<16x1xf32>
    %cst_124 = arith.constant 0.000000e+00 : f32
    %261 = vector.broadcast %cst_124 : f32 to vector<16x1xf32>
    %262 = arith.select %259, %260, %261 : vector<16x1xi1>, vector<16x1xf32>
    %263 = vector.broadcast %262 : vector<16x1xf32> to vector<16x16xf32>
    %264 = arith.mulf %255, %263 : vector<16x16xf32>
    %cst_125 = arith.constant dense<0.000000e+00> : vector<16x8xf32>
    %265 = tpu.matmul %264, %238, %cst_125 {dimension_numbers = #tpu.dot_dimension_numbers<[1], [0], [0], [1], [0, 0, 1, 1], [], []>} : vector<16x16xf32>, vector<16x8xf32>, vector<16x8xf32> -> vector<16x8xf32>
    %266 = vector.extract_strided_slice %234 {offsets = [0, 0], sizes = [8, 32], strides = [1, 1]} : vector<32x32xf32> to vector<8x32xf32>
    %cst_126 = arith.constant dense<0.000000e+00> : vector<16x32xf32>
    %267 = tpu.matmul %265, %266, %cst_126 {dimension_numbers = #tpu.dot_dimension_numbers<[1], [0], [0], [1], [0, 0, 1, 1], [], []>} : vector<16x8xf32>, vector<8x32xf32>, vector<16x32xf32> -> vector<16x32xf32>
    %268 = arith.addf %235, %267 : vector<16x32xf32>
    %269 = vector.extract_strided_slice %232 {offsets = [0, 24], sizes = [16, 8], strides = [1, 1]} : vector<16x96xf32> to vector<16x8xf32>
    %270 = vector.extract_strided_slice %232 {offsets = [0, 32], sizes = [16, 8], strides = [1, 1]} : vector<16x96xf32> to vector<16x8xf32>
    %271 = vector.extract_strided_slice %232 {offsets = [0, 40], sizes = [16, 8], strides = [1, 1]} : vector<16x96xf32> to vector<16x8xf32>
    %cst_127 = arith.constant dense<0.000000e+00> : vector<16x16xf32>
    %272 = tpu.matmul %269, %270, %cst_127 {dimension_numbers = #tpu.dot_dimension_numbers<[1], [1], [0], [0], [0, 0, 1, 0], [], []>} : vector<16x8xf32>, vector<16x8xf32>, vector<16x16xf32> -> vector<16x16xf32>
    %cst_128 = arith.constant 0.353553385 : f32
    %273 = vector.broadcast %cst_128 : f32 to vector<16x16xf32>
    %274 = arith.mulf %272, %273 : vector<16x16xf32>
    %cst_129 = arith.constant 0.000000e+00 : f32
    %275 = vector.broadcast %cst_129 : f32 to vector<16x16xf32>
    %276 = arith.cmpf oeq, %274, %275 : vector<16x16xf32>
    %cst_130 = arith.constant 0xFF800000 : f32
    %277 = vector.broadcast %cst_130 : f32 to vector<16x16xf32>
    %278 = arith.select %276, %277, %274 : vector<16x16xi1>, vector<16x16xf32>
    %279 = arith.addf %278, %3 : vector<16x16xf32>
    %cst_131 = arith.constant dense<0xFF800000> : vector<16xf32>
    %280 = vector.multi_reduction <maximumf>, %279, %cst_131 [1] : vector<16x16xf32> to vector<16xf32>
    %281 = vector.shape_cast %280 : vector<16xf32> to vector<16x1xf32>
    %cst_132 = arith.constant 0xFF800000 : f32
    %282 = vector.broadcast %cst_132 : f32 to vector<16x1xf32>
    %283 = arith.cmpf oeq, %281, %282 : vector<16x1xf32>
    %cst_133 = arith.constant 0.000000e+00 : f32
    %284 = vector.broadcast %cst_133 : f32 to vector<16x1xf32>
    %285 = arith.select %283, %284, %281 : vector<16x1xi1>, vector<16x1xf32>
    %286 = vector.broadcast %285 : vector<16x1xf32> to vector<16x16xf32>
    %287 = arith.subf %279, %286 : vector<16x16xf32>
    %288 = math.exp %287 : vector<16x16xf32>
    %cst_134 = arith.constant dense<0.000000e+00> : vector<16xf32>
    %289 = vector.multi_reduction <add>, %288, %cst_134 [1] : vector<16x16xf32> to vector<16xf32>
    %290 = vector.shape_cast %289 : vector<16xf32> to vector<16x1xf32>
    %cst_135 = arith.constant 0.000000e+00 : f32
    %291 = vector.broadcast %cst_135 : f32 to vector<16x1xf32>
    %292 = arith.cmpf ogt, %290, %291 : vector<16x1xf32>
    %293 = tpu.reciprocal %290 {approx = true} : vector<16x1xf32> -> vector<16x1xf32>
    %cst_136 = arith.constant 0.000000e+00 : f32
    %294 = vector.broadcast %cst_136 : f32 to vector<16x1xf32>
    %295 = arith.select %292, %293, %294 : vector<16x1xi1>, vector<16x1xf32>
    %296 = vector.broadcast %295 : vector<16x1xf32> to vector<16x16xf32>
    %297 = arith.mulf %288, %296 : vector<16x16xf32>
    %cst_137 = arith.constant dense<0.000000e+00> : vector<16x8xf32>
    %298 = tpu.matmul %297, %271, %cst_137 {dimension_numbers = #tpu.dot_dimension_numbers<[1], [0], [0], [1], [0, 0, 1, 1], [], []>} : vector<16x16xf32>, vector<16x8xf32>, vector<16x8xf32> -> vector<16x8xf32>
    %299 = vector.extract_strided_slice %234 {offsets = [8, 0], sizes = [8, 32], strides = [1, 1]} : vector<32x32xf32> to vector<8x32xf32>
    %cst_138 = arith.constant dense<0.000000e+00> : vector<16x32xf32>
    %300 = tpu.matmul %298, %299, %cst_138 {dimension_numbers = #tpu.dot_dimension_numbers<[1], [0], [0], [1], [0, 0, 1, 1], [], []>} : vector<16x8xf32>, vector<8x32xf32>, vector<16x32xf32> -> vector<16x32xf32>
    %301 = arith.addf %268, %300 : vector<16x32xf32>
    %302 = vector.extract_strided_slice %232 {offsets = [0, 48], sizes = [16, 8], strides = [1, 1]} : vector<16x96xf32> to vector<16x8xf32>
    %303 = vector.extract_strided_slice %232 {offsets = [0, 56], sizes = [16, 8], strides = [1, 1]} : vector<16x96xf32> to vector<16x8xf32>
    %304 = vector.extract_strided_slice %232 {offsets = [0, 64], sizes = [16, 8], strides = [1, 1]} : vector<16x96xf32> to vector<16x8xf32>
    %cst_139 = arith.constant dense<0.000000e+00> : vector<16x16xf32>
    %305 = tpu.matmul %302, %303, %cst_139 {dimension_numbers = #tpu.dot_dimension_numbers<[1], [1], [0], [0], [0, 0, 1, 0], [], []>} : vector<16x8xf32>, vector<16x8xf32>, vector<16x16xf32> -> vector<16x16xf32>
    %cst_140 = arith.constant 0.353553385 : f32
    %306 = vector.broadcast %cst_140 : f32 to vector<16x16xf32>
    %307 = arith.mulf %305, %306 : vector<16x16xf32>
    %cst_141 = arith.constant 0.000000e+00 : f32
    %308 = vector.broadcast %cst_141 : f32 to vector<16x16xf32>
    %309 = arith.cmpf oeq, %307, %308 : vector<16x16xf32>
    %cst_142 = arith.constant 0xFF800000 : f32
    %310 = vector.broadcast %cst_142 : f32 to vector<16x16xf32>
    %311 = arith.select %309, %310, %307 : vector<16x16xi1>, vector<16x16xf32>
    %312 = arith.addf %311, %3 : vector<16x16xf32>
    %cst_143 = arith.constant dense<0xFF800000> : vector<16xf32>
    %313 = vector.multi_reduction <maximumf>, %312, %cst_143 [1] : vector<16x16xf32> to vector<16xf32>
    %314 = vector.shape_cast %313 : vector<16xf32> to vector<16x1xf32>
    %cst_144 = arith.constant 0xFF800000 : f32
    %315 = vector.broadcast %cst_144 : f32 to vector<16x1xf32>
    %316 = arith.cmpf oeq, %314, %315 : vector<16x1xf32>
    %cst_145 = arith.constant 0.000000e+00 : f32
    %317 = vector.broadcast %cst_145 : f32 to vector<16x1xf32>
    %318 = arith.select %316, %317, %314 : vector<16x1xi1>, vector<16x1xf32>
    %319 = vector.broadcast %318 : vector<16x1xf32> to vector<16x16xf32>
    %320 = arith.subf %312, %319 : vector<16x16xf32>
    %321 = math.exp %320 : vector<16x16xf32>
    %cst_146 = arith.constant dense<0.000000e+00> : vector<16xf32>
    %322 = vector.multi_reduction <add>, %321, %cst_146 [1] : vector<16x16xf32> to vector<16xf32>
    %323 = vector.shape_cast %322 : vector<16xf32> to vector<16x1xf32>
    %cst_147 = arith.constant 0.000000e+00 : f32
    %324 = vector.broadcast %cst_147 : f32 to vector<16x1xf32>
    %325 = arith.cmpf ogt, %323, %324 : vector<16x1xf32>
    %326 = tpu.reciprocal %323 {approx = true} : vector<16x1xf32> -> vector<16x1xf32>
    %cst_148 = arith.constant 0.000000e+00 : f32
    %327 = vector.broadcast %cst_148 : f32 to vector<16x1xf32>
    %328 = arith.select %325, %326, %327 : vector<16x1xi1>, vector<16x1xf32>
    %329 = vector.broadcast %328 : vector<16x1xf32> to vector<16x16xf32>
    %330 = arith.mulf %321, %329 : vector<16x16xf32>
    %cst_149 = arith.constant dense<0.000000e+00> : vector<16x8xf32>
    %331 = tpu.matmul %330, %304, %cst_149 {dimension_numbers = #tpu.dot_dimension_numbers<[1], [0], [0], [1], [0, 0, 1, 1], [], []>} : vector<16x16xf32>, vector<16x8xf32>, vector<16x8xf32> -> vector<16x8xf32>
    %332 = vector.extract_strided_slice %234 {offsets = [16, 0], sizes = [8, 32], strides = [1, 1]} : vector<32x32xf32> to vector<8x32xf32>
    %cst_150 = arith.constant dense<0.000000e+00> : vector<16x32xf32>
    %333 = tpu.matmul %331, %332, %cst_150 {dimension_numbers = #tpu.dot_dimension_numbers<[1], [0], [0], [1], [0, 0, 1, 1], [], []>} : vector<16x8xf32>, vector<8x32xf32>, vector<16x32xf32> -> vector<16x32xf32>
    %334 = arith.addf %301, %333 : vector<16x32xf32>
    %335 = vector.extract_strided_slice %232 {offsets = [0, 72], sizes = [16, 8], strides = [1, 1]} : vector<16x96xf32> to vector<16x8xf32>
    %336 = vector.extract_strided_slice %232 {offsets = [0, 80], sizes = [16, 8], strides = [1, 1]} : vector<16x96xf32> to vector<16x8xf32>
    %337 = vector.extract_strided_slice %232 {offsets = [0, 88], sizes = [16, 8], strides = [1, 1]} : vector<16x96xf32> to vector<16x8xf32>
    %cst_151 = arith.constant dense<0.000000e+00> : vector<16x16xf32>
    %338 = tpu.matmul %335, %336, %cst_151 {dimension_numbers = #tpu.dot_dimension_numbers<[1], [1], [0], [0], [0, 0, 1, 0], [], []>} : vector<16x8xf32>, vector<16x8xf32>, vector<16x16xf32> -> vector<16x16xf32>
    %cst_152 = arith.constant 0.353553385 : f32
    %339 = vector.broadcast %cst_152 : f32 to vector<16x16xf32>
    %340 = arith.mulf %338, %339 : vector<16x16xf32>
    %cst_153 = arith.constant 0.000000e+00 : f32
    %341 = vector.broadcast %cst_153 : f32 to vector<16x16xf32>
    %342 = arith.cmpf oeq, %340, %341 : vector<16x16xf32>
    %cst_154 = arith.constant 0xFF800000 : f32
    %343 = vector.broadcast %cst_154 : f32 to vector<16x16xf32>
    %344 = arith.select %342, %343, %340 : vector<16x16xi1>, vector<16x16xf32>
    %345 = arith.addf %344, %3 : vector<16x16xf32>
    %cst_155 = arith.constant dense<0xFF800000> : vector<16xf32>
    %346 = vector.multi_reduction <maximumf>, %345, %cst_155 [1] : vector<16x16xf32> to vector<16xf32>
    %347 = vector.shape_cast %346 : vector<16xf32> to vector<16x1xf32>
    %cst_156 = arith.constant 0xFF800000 : f32
    %348 = vector.broadcast %cst_156 : f32 to vector<16x1xf32>
    %349 = arith.cmpf oeq, %347, %348 : vector<16x1xf32>
    %cst_157 = arith.constant 0.000000e+00 : f32
    %350 = vector.broadcast %cst_157 : f32 to vector<16x1xf32>
    %351 = arith.select %349, %350, %347 : vector<16x1xi1>, vector<16x1xf32>
    %352 = vector.broadcast %351 : vector<16x1xf32> to vector<16x16xf32>
    %353 = arith.subf %345, %352 : vector<16x16xf32>
    %354 = math.exp %353 : vector<16x16xf32>
    %cst_158 = arith.constant dense<0.000000e+00> : vector<16xf32>
    %355 = vector.multi_reduction <add>, %354, %cst_158 [1] : vector<16x16xf32> to vector<16xf32>
    %356 = vector.shape_cast %355 : vector<16xf32> to vector<16x1xf32>
    %cst_159 = arith.constant 0.000000e+00 : f32
    %357 = vector.broadcast %cst_159 : f32 to vector<16x1xf32>
    %358 = arith.cmpf ogt, %356, %357 : vector<16x1xf32>
    %359 = tpu.reciprocal %356 {approx = true} : vector<16x1xf32> -> vector<16x1xf32>
    %cst_160 = arith.constant 0.000000e+00 : f32
    %360 = vector.broadcast %cst_160 : f32 to vector<16x1xf32>
    %361 = arith.select %358, %359, %360 : vector<16x1xi1>, vector<16x1xf32>
    %362 = vector.broadcast %361 : vector<16x1xf32> to vector<16x16xf32>
    %363 = arith.mulf %354, %362 : vector<16x16xf32>
    %cst_161 = arith.constant dense<0.000000e+00> : vector<16x8xf32>
    %364 = tpu.matmul %363, %337, %cst_161 {dimension_numbers = #tpu.dot_dimension_numbers<[1], [0], [0], [1], [0, 0, 1, 1], [], []>} : vector<16x16xf32>, vector<16x8xf32>, vector<16x8xf32> -> vector<16x8xf32>
    %365 = vector.extract_strided_slice %234 {offsets = [24, 0], sizes = [8, 32], strides = [1, 1]} : vector<32x32xf32> to vector<8x32xf32>
    %cst_162 = arith.constant dense<0.000000e+00> : vector<16x32xf32>
    %366 = tpu.matmul %364, %365, %cst_162 {dimension_numbers = #tpu.dot_dimension_numbers<[1], [0], [0], [1], [0, 0, 1, 1], [], []>} : vector<16x8xf32>, vector<8x32xf32>, vector<16x32xf32> -> vector<16x32xf32>
    %367 = arith.addf %334, %366 : vector<16x32xf32>
    %c1_163 = arith.constant 1 : index
    %c0_164 = arith.constant 0 : index
    %c0_165 = arith.constant 0 : index
    %368 = vector.load %arg6[%c1_163, %c0_164, %c0_165] : memref<2x1x32xf32, #tpu.memory_space<vmem>>, vector<1x1x32xf32>
    %369 = vector.shape_cast %368 : vector<1x1x32xf32> to vector<1x32xf32>
    %370 = vector.broadcast %369 : vector<1x32xf32> to vector<16x32xf32>
    %371 = arith.addf %367, %370 : vector<16x32xf32>
    %372 = arith.addf %225, %371 : vector<16x32xf32>
    %c1_166 = arith.constant 1 : index
    %c0_167 = arith.constant 0 : index
    %c0_168 = arith.constant 0 : index
    %373 = vector.load %arg7[%c1_166, %c0_167, %c0_168] : memref<2x1x32xf32, #tpu.memory_space<vmem>>, vector<1x1x32xf32>
    %374 = vector.shape_cast %373 : vector<1x1x32xf32> to vector<1x32xf32>
    %c1_169 = arith.constant 1 : index
    %c0_170 = arith.constant 0 : index
    %c0_171 = arith.constant 0 : index
    %375 = vector.load %arg8[%c1_169, %c0_170, %c0_171] : memref<2x1x32xf32, #tpu.memory_space<vmem>>, vector<1x1x32xf32>
    %376 = vector.shape_cast %375 : vector<1x1x32xf32> to vector<1x32xf32>
    %cst_172 = arith.constant dense<0.000000e+00> : vector<16xf32>
    %377 = vector.multi_reduction <add>, %372, %cst_172 [1] : vector<16x32xf32> to vector<16xf32>
    %378 = vector.shape_cast %377 : vector<16xf32> to vector<16x1xf32>
    %cst_173 = arith.constant 3.200000e+01 : f32
    %379 = vector.broadcast %cst_173 : f32 to vector<16x1xf32>
    %380 = arith.divf %378, %379 : vector<16x1xf32>
    %381 = vector.broadcast %380 : vector<16x1xf32> to vector<16x32xf32>
    %382 = arith.subf %372, %381 : vector<16x32xf32>
    %383 = arith.mulf %382, %382 : vector<16x32xf32>
    %cst_174 = arith.constant dense<0.000000e+00> : vector<16xf32>
    %384 = vector.multi_reduction <add>, %383, %cst_174 [1] : vector<16x32xf32> to vector<16xf32>
    %385 = vector.shape_cast %384 : vector<16xf32> to vector<16x1xf32>
    %cst_175 = arith.constant 3.200000e+01 : f32
    %386 = vector.broadcast %cst_175 : f32 to vector<16x1xf32>
    %387 = arith.divf %385, %386 : vector<16x1xf32>
    %388 = vector.broadcast %380 : vector<16x1xf32> to vector<16x32xf32>
    %389 = arith.subf %372, %388 : vector<16x32xf32>
    %cst_176 = arith.constant 9.99999974E-6 : f32
    %390 = vector.broadcast %cst_176 : f32 to vector<16x1xf32>
    %391 = arith.addf %387, %390 : vector<16x1xf32>
    %392 = math.rsqrt %391 : vector<16x1xf32>
    %393 = vector.broadcast %392 : vector<16x1xf32> to vector<16x32xf32>
    %394 = arith.mulf %389, %393 : vector<16x32xf32>
    %395 = vector.broadcast %374 : vector<1x32xf32> to vector<16x32xf32>
    %396 = arith.mulf %394, %395 : vector<16x32xf32>
    %397 = vector.broadcast %376 : vector<1x32xf32> to vector<16x32xf32>
    %398 = arith.addf %396, %397 : vector<16x32xf32>
    %c1_177 = arith.constant 1 : index
    %c0_178 = arith.constant 0 : index
    %c0_179 = arith.constant 0 : index
    %399 = vector.load %arg9[%c1_177, %c0_178, %c0_179] : memref<2x32x64xf32, #tpu.memory_space<vmem>>, vector<1x32x64xf32>
    %400 = vector.shape_cast %399 : vector<1x32x64xf32> to vector<32x64xf32>
    %cst_180 = arith.constant dense<0.000000e+00> : vector<16x64xf32>
    %401 = tpu.matmul %398, %400, %cst_180 {dimension_numbers = #tpu.dot_dimension_numbers<[1], [0], [0], [1], [0, 0, 1, 1], [], []>} : vector<16x32xf32>, vector<32x64xf32>, vector<16x64xf32> -> vector<16x64xf32>
    %c1_181 = arith.constant 1 : index
    %c0_182 = arith.constant 0 : index
    %c0_183 = arith.constant 0 : index
    %402 = vector.load %arg10[%c1_181, %c0_182, %c0_183] : memref<2x1x64xf32, #tpu.memory_space<vmem>>, vector<1x1x64xf32>
    %403 = vector.shape_cast %402 : vector<1x1x64xf32> to vector<1x64xf32>
    %404 = vector.broadcast %403 : vector<1x64xf32> to vector<16x64xf32>
    %405 = arith.addf %401, %404 : vector<16x64xf32>
    %cst_184 = arith.constant 5.000000e-01 : f32
    %406 = vector.broadcast %cst_184 : f32 to vector<16x64xf32>
    %407 = arith.mulf %406, %405 : vector<16x64xf32>
    %cst_185 = arith.constant 0.707106769 : f32
    %408 = vector.broadcast %cst_185 : f32 to vector<16x64xf32>
    %409 = arith.mulf %405, %408 : vector<16x64xf32>
    %410 = math.erf %409 : vector<16x64xf32>
    %cst_186 = arith.constant 1.000000e+00 : f32
    %411 = vector.broadcast %cst_186 : f32 to vector<16x64xf32>
    %412 = arith.addf %411, %410 : vector<16x64xf32>
    %413 = arith.mulf %407, %412 : vector<16x64xf32>
    %c1_187 = arith.constant 1 : index
    %c0_188 = arith.constant 0 : index
    %c0_189 = arith.constant 0 : index
    %414 = vector.load %arg11[%c1_187, %c0_188, %c0_189] : memref<2x64x32xf32, #tpu.memory_space<vmem>>, vector<1x64x32xf32>
    %415 = vector.shape_cast %414 : vector<1x64x32xf32> to vector<64x32xf32>
    %cst_190 = arith.constant dense<0.000000e+00> : vector<16x32xf32>
    %416 = tpu.matmul %413, %415, %cst_190 {dimension_numbers = #tpu.dot_dimension_numbers<[1], [0], [0], [1], [0, 0, 1, 1], [], []>} : vector<16x64xf32>, vector<64x32xf32>, vector<16x32xf32> -> vector<16x32xf32>
    %c1_191 = arith.constant 1 : index
    %c0_192 = arith.constant 0 : index
    %c0_193 = arith.constant 0 : index
    %417 = vector.load %arg12[%c1_191, %c0_192, %c0_193] : memref<2x1x32xf32, #tpu.memory_space<vmem>>, vector<1x1x32xf32>
    %418 = vector.shape_cast %417 : vector<1x1x32xf32> to vector<1x32xf32>
    %419 = vector.broadcast %418 : vector<1x32xf32> to vector<16x32xf32>
    %420 = arith.addf %416, %419 : vector<16x32xf32>
    %421 = arith.addf %398, %420 : vector<16x32xf32>
    %c1_194 = arith.constant 1 : index
    %c0_195 = arith.constant 0 : index
    %c0_196 = arith.constant 0 : index
    %422 = vector.load %arg13[%c1_194, %c0_195, %c0_196] : memref<2x1x32xf32, #tpu.memory_space<vmem>>, vector<1x1x32xf32>
    %423 = vector.shape_cast %422 : vector<1x1x32xf32> to vector<1x32xf32>
    %c1_197 = arith.constant 1 : index
    %c0_198 = arith.constant 0 : index
    %c0_199 = arith.constant 0 : index
    %424 = vector.load %arg14[%c1_197, %c0_198, %c0_199] : memref<2x1x32xf32, #tpu.memory_space<vmem>>, vector<1x1x32xf32>
    %425 = vector.shape_cast %424 : vector<1x1x32xf32> to vector<1x32xf32>
    %cst_200 = arith.constant dense<0.000000e+00> : vector<16xf32>
    %426 = vector.multi_reduction <add>, %421, %cst_200 [1] : vector<16x32xf32> to vector<16xf32>
    %427 = vector.shape_cast %426 : vector<16xf32> to vector<16x1xf32>
    %cst_201 = arith.constant 3.200000e+01 : f32
    %428 = vector.broadcast %cst_201 : f32 to vector<16x1xf32>
    %429 = arith.divf %427, %428 : vector<16x1xf32>
    %430 = vector.broadcast %429 : vector<16x1xf32> to vector<16x32xf32>
    %431 = arith.subf %421, %430 : vector<16x32xf32>
    %432 = arith.mulf %431, %431 : vector<16x32xf32>
    %cst_202 = arith.constant dense<0.000000e+00> : vector<16xf32>
    %433 = vector.multi_reduction <add>, %432, %cst_202 [1] : vector<16x32xf32> to vector<16xf32>
    %434 = vector.shape_cast %433 : vector<16xf32> to vector<16x1xf32>
    %cst_203 = arith.constant 3.200000e+01 : f32
    %435 = vector.broadcast %cst_203 : f32 to vector<16x1xf32>
    %436 = arith.divf %434, %435 : vector<16x1xf32>
    %437 = vector.broadcast %429 : vector<16x1xf32> to vector<16x32xf32>
    %438 = arith.subf %421, %437 : vector<16x32xf32>
    %cst_204 = arith.constant 9.99999974E-6 : f32
    %439 = vector.broadcast %cst_204 : f32 to vector<16x1xf32>
    %440 = arith.addf %436, %439 : vector<16x1xf32>
    %441 = math.rsqrt %440 : vector<16x1xf32>
    %442 = vector.broadcast %441 : vector<16x1xf32> to vector<16x32xf32>
    %443 = arith.mulf %438, %442 : vector<16x32xf32>
    %444 = vector.broadcast %423 : vector<1x32xf32> to vector<16x32xf32>
    %445 = arith.mulf %443, %444 : vector<16x32xf32>
    %446 = vector.broadcast %425 : vector<1x32xf32> to vector<16x32xf32>
    %447 = arith.addf %445, %446 : vector<16x32xf32>
    %448 = vector.extract_strided_slice %447 {offsets = [0, 0], sizes = [1, 32], strides = [1, 1]} : vector<16x32xf32> to vector<1x32xf32>
    %c0_205 = arith.constant 0 : index
    %c0_206 = arith.constant 0 : index
    %449 = vector.load %arg15[%c0_205, %c0_206] : memref<32x64xf32, #tpu.memory_space<vmem>>, vector<32x64xf32>
    %cst_207 = arith.constant dense<0.000000e+00> : vector<1x64xf32>
    %450 = tpu.matmul %448, %449, %cst_207 {dimension_numbers = #tpu.dot_dimension_numbers<[1], [0], [0], [1], [0, 0, 1, 1], [], []>} : vector<1x32xf32>, vector<32x64xf32>, vector<1x64xf32> -> vector<1x64xf32>
    %c0_208 = arith.constant 0 : index
    %c0_209 = arith.constant 0 : index
    %451 = vector.load %arg16[%c0_208, %c0_209] : memref<1x64xf32, #tpu.memory_space<vmem>>, vector<1x64xf32>
    %452 = arith.addf %450, %451 : vector<1x64xf32>
    %453 = math.tanh %452 : vector<1x64xf32>
    %c0_210 = arith.constant 0 : index
    %c0_211 = arith.constant 0 : index
    %454 = vector.load %arg17[%c0_210, %c0_211] : memref<1x64xf32, #tpu.memory_space<vmem>>, vector<1x64xf32>
    %455 = arith.mulf %453, %454 : vector<1x64xf32>
    %cst_212 = arith.constant dense<0.000000e+00> : vector<1xf32>
    %456 = vector.multi_reduction <add>, %455, %cst_212 [1] : vector<1x64xf32> to vector<1xf32>
    %457 = vector.shape_cast %456 : vector<1xf32> to vector<1x1xf32>
    %c0_213 = arith.constant 0 : index
    %c0_214 = arith.constant 0 : index
    %c0_215 = arith.constant 0 : index
    %458 = vector.load %arg18[%c0_213, %c0_214, %c0_215] : memref<1x1x1xf32, #tpu.memory_space<vmem>>, vector<1x1x1xf32>
    %459 = vector.shape_cast %458 : vector<1x1x1xf32> to vector<1x1xf32>
    %460 = vector.shape_cast %457 : vector<1x1xf32> to vector<1x1x1xf32>
    tpu.vector_store %arg18[%c0_213, %c0_214, %c0_215], %460 {strides = array<i32>} : memref<1x1x1xf32, #tpu.memory_space<vmem>>, vector<1x1x1xf32>,
    return
  }
  func.func @transform_0(%arg0: i32) -> (i32, i32, i32) {
    %c0_i32 = arith.constant 0 : i32
    %c0_i32_0 = arith.constant 0 : i32
    %c0_i32_1 = arith.constant 0 : i32
    return %arg0, %c0_i32, %c0_i32_0 : i32, i32, i32
  }
  func.func @transform_1(%arg0: i32) -> (i32, i32, i32) {
    %c0_i32 = arith.constant 0 : i32
    %c0_i32_0 = arith.constant 0 : i32
    %c0_i32_1 = arith.constant 0 : i32
    return %arg0, %c0_i32, %c0_i32_0 : i32, i32, i32
  }
  func.func @transform_2(%arg0: i32) -> (i32, i32, i32) {
    %c0_i32 = arith.constant 0 : i32
    %c0_i32_0 = arith.constant 0 : i32
    %c0_i32_1 = arith.constant 0 : i32
    %c0_i32_2 = arith.constant 0 : i32
    return %c0_i32, %c0_i32_0, %c0_i32_1 : i32, i32, i32
  }
  func.func @transform_3(%arg0: i32) -> (i32, i32, i32) {
    %c0_i32 = arith.constant 0 : i32
    %c0_i32_0 = arith.constant 0 : i32
    %c0_i32_1 = arith.constant 0 : i32
    %c0_i32_2 = arith.constant 0 : i32
    return %c0_i32, %c0_i32_0, %c0_i32_1 : i32, i32, i32
  }
  func.func @transform_4(%arg0: i32) -> (i32, i32, i32) {
    %c0_i32 = arith.constant 0 : i32
    %c0_i32_0 = arith.constant 0 : i32
    %c0_i32_1 = arith.constant 0 : i32
    %c0_i32_2 = arith.constant 0 : i32
    return %c0_i32, %c0_i32_0, %c0_i32_1 : i32, i32, i32
  }
  func.func @transform_5(%arg0: i32) -> (i32, i32, i32) {
    %c0_i32 = arith.constant 0 : i32
    %c0_i32_0 = arith.constant 0 : i32
    %c0_i32_1 = arith.constant 0 : i32
    %c0_i32_2 = arith.constant 0 : i32
    return %c0_i32, %c0_i32_0, %c0_i32_1 : i32, i32, i32
  }
  func.func @transform_6(%arg0: i32) -> (i32, i32, i32) {
    %c0_i32 = arith.constant 0 : i32
    %c0_i32_0 = arith.constant 0 : i32
    %c0_i32_1 = arith.constant 0 : i32
    %c0_i32_2 = arith.constant 0 : i32
    return %c0_i32, %c0_i32_0, %c0_i32_1 : i32, i32, i32
  }
  func.func @transform_7(%arg0: i32) -> (i32, i32, i32) {
    %c0_i32 = arith.constant 0 : i32
    %c0_i32_0 = arith.constant 0 : i32
    %c0_i32_1 = arith.constant 0 : i32
    %c0_i32_2 = arith.constant 0 : i32
    return %c0_i32, %c0_i32_0, %c0_i32_1 : i32, i32, i32
  }
  func.func @transform_8(%arg0: i32) -> (i32, i32, i32) {
    %c0_i32 = arith.constant 0 : i32
    %c0_i32_0 = arith.constant 0 : i32
    %c0_i32_1 = arith.constant 0 : i32
    %c0_i32_2 = arith.constant 0 : i32
    return %c0_i32, %c0_i32_0, %c0_i32_1 : i32, i32, i32
  }
  func.func @transform_9(%arg0: i32) -> (i32, i32, i32) {
    %c0_i32 = arith.constant 0 : i32
    %c0_i32_0 = arith.constant 0 : i32
    %c0_i32_1 = arith.constant 0 : i32
    %c0_i32_2 = arith.constant 0 : i32
    return %c0_i32, %c0_i32_0, %c0_i32_1 : i32, i32, i32
  }
  func.func @transform_10(%arg0: i32) -> (i32, i32, i32) {
    %c0_i32 = arith.constant 0 : i32
    %c0_i32_0 = arith.constant 0 : i32
    %c0_i32_1 = arith.constant 0 : i32
    %c0_i32_2 = arith.constant 0 : i32
    return %c0_i32, %c0_i32_0, %c0_i32_1 : i32, i32, i32
  }
  func.func @transform_11(%arg0: i32) -> (i32, i32, i32) {
    %c0_i32 = arith.constant 0 : i32
    %c0_i32_0 = arith.constant 0 : i32
    %c0_i32_1 = arith.constant 0 : i32
    %c0_i32_2 = arith.constant 0 : i32
    return %c0_i32, %c0_i32_0, %c0_i32_1 : i32, i32, i32
  }
  func.func @transform_12(%arg0: i32) -> (i32, i32, i32) {
    %c0_i32 = arith.constant 0 : i32
    %c0_i32_0 = arith.constant 0 : i32
    %c0_i32_1 = arith.constant 0 : i32
    %c0_i32_2 = arith.constant 0 : i32
    return %c0_i32, %c0_i32_0, %c0_i32_1 : i32, i32, i32
  }
  func.func @transform_13(%arg0: i32) -> (i32, i32, i32) {
    %c0_i32 = arith.constant 0 : i32
    %c0_i32_0 = arith.constant 0 : i32
    %c0_i32_1 = arith.constant 0 : i32
    %c0_i32_2 = arith.constant 0 : i32
    return %c0_i32, %c0_i32_0, %c0_i32_1 : i32, i32, i32
  }
  func.func @transform_14(%arg0: i32) -> (i32, i32) {
    %c0_i32 = arith.constant 0 : i32
    %c0_i32_0 = arith.constant 0 : i32
    %c0_i32_1 = arith.constant 0 : i32
    return %c0_i32, %c0_i32_0 : i32, i32
  }
  func.func @transform_15(%arg0: i32) -> (i32, i32) {
    %c0_i32 = arith.constant 0 : i32
    %c0_i32_0 = arith.constant 0 : i32
    %c0_i32_1 = arith.constant 0 : i32
    return %c0_i32, %c0_i32_0 : i32, i32
  }
  func.func @transform_16(%arg0: i32) -> (i32, i32) {
    %c0_i32 = arith.constant 0 : i32
    %c0_i32_0 = arith.constant 0 : i32
    %c0_i32_1 = arith.constant 0 : i32
    return %c0_i32, %c0_i32_0 : i32, i32
  }
  func.func @transform_17(%arg0: i32) -> (i32, i32, i32) {
    %c0_i32 = arith.constant 0 : i32
    %c0_i32_0 = arith.constant 0 : i32
    %c0_i32_1 = arith.constant 0 : i32
    return %arg0, %c0_i32, %c0_i32_0 : i32, i32, i32
  }
}

</mosaic_0001>

<bundles_post_ra>
// kernel: encoder_forward.1
= control target key start
LH: loop header
LB: loop body
LE: loop exit
PB: predicated region body
PF: predicated region fallthrough
CT: control target
= control target key end

     0   :  { %s4623_s24 = smov 0   ;;  %s5138_s0 = inlined_call_operand.vmem [shape: f32[2,16,32], index: 0, kind: input, shape index: {}]   ;;  %s5139_s1 = inlined_call_operand.vmem [shape: f32[2,16,16], index: 1, kind: input, shape index: {}]   ;;  %s5140_s2 = inlined_call_operand.vmem [shape: f32[2,32,96], index: 2, kind: input, shape index: {}]   ;;  %s5141_s3 = inlined_call_operand.vmem [shape: f32[2,1,96], index: 3, kind: input, shape index: {}]   ;;  %s5142_s4 = inlined_call_operand.vmem [shape: f32[2,32,32], index: 4, kind: input, shape index: {}]   ;;  %s5143_s5 = inlined_call_operand.vmem [shape: f32[2,1,32], index: 5, kind: input, shape index: {}]   ;;  %s5144_s6 = inlined_call_operand.vmem [shape: f32[2,1,32], index: 6, kind: input, shape index: {}]   ;;  %s5145_s7 = inlined_call_operand.vmem [shape: f32[2,1,32], index: 7, kind: input, shape index: {}]   ;;  %s5146_s8 = inlined_call_operand.vmem [shape: f32[2,32,64], index: 8, kind: input, shape index: {}]   ;;  %s5147_s9 = inlined_call_operand.vmem [shape: f32[2,1,64], index: 9, kind: input, shape index: {}]   ;;  %s5148_s10 = inlined_call_operand.vmem [shape: f32[2,64,32], index: 10, kind: input, shape index: {}]   ;;  %s5149_s11 = inlined_call_operand.vmem [shape: f32[2,1,32], index: 11, kind: input, shape index: {}]   ;;  %s5150_s12 = inlined_call_operand.vmem [shape: f32[2,1,32], index: 12, kind: input, shape index: {}]   ;;  %s5151_s13 = inlined_call_operand.vmem [shape: f32[2,1,32], index: 13, kind: input, shape index: {}]   ;;  %s5152_s14 = inlined_call_operand.vmem [shape: f32[32,64], index: 14, kind: input, shape index: {}]   ;;  %s5153_s15 = inlined_call_operand.vmem [shape: f32[1,64], index: 15, kind: input, shape index: {}]   ;;  %s5154_s16 = inlined_call_operand.vmem [shape: f32[1,64], index: 16, kind: input, shape index: {}]   ;;  %s5155_s17 = inlined_call_operand.vmem [shape: f32[2,1,1], index: 17, kind: output, shape index: {}]  }
   0x1   :  { %5170 = sst [smem:[#allocation2_spill]] %s5138_s0 }
   0x2   :  { %5171 = sst [smem:[#allocation3_spill]] %s5139_s1 }
   0x3 LB: > { %s3885_s25 = sadd.s32 4294967295, %s4518_s24   ;;  %p3889_p0 = scmp.ge.s32.totalorder %s4518_s24, 1  ;;  %s4518_s24 = sphi %s4623_s24, %s27_s24  }
   0x4   : > { %p497_p1 = scmp.lt.s32.totalorder %s4518_s24, 3 }
   0x6   : > { %p498_p2 = pnand %p3889_p0, %p497_p1 }
   0x7   : > { %p552_p3 = scmp.lt.s32.totalorder (!%p498_p2), %s3885_s25, 1  ;;  %s5172_s22 = sld [smem:[#allocation2_spill]] (!%p498_p2) }
   0x8   : > { %501 = sbr.rel (%p498_p2) target bundleno = 7354 (0x1cba), region = 88  ;;  %s4520_s28 = smov (!%p498_p2), 96  }
   0x9   : > { %s4521_s29 = smov (!%p498_p2), 120   ;;  %s4522_s0 = smov (!%p498_p2), 104  }
   0xa   : > { %s5173_s19 = sld [smem:[#allocation3_spill]] (!%p498_p2)  ;;  %s5168_s21 = smov (!%p498_p2), 88  }
   0xb   : > { %s5162_s26 = smov (!%p498_p2), 48   ;;  %s5160_s27 = smov (!%p498_p2), 56  }
   0xc   : > { %s5156_s18 = smov (!%p498_p2), 64   ;;  %s5178_s30 = smov (!%p498_p2), 56  }
   0xd   : > { %v572_v0 = vld [vmem:[%s5140_s2 + $0x18] sm:$0xff]  ;;  %v571_v1 = vld [vmem:[%s5140_s2 + $0x10] sm:$0xff]  ;;  %v570_v2 = vld [vmem:[%s5140_s2 + $0x8] sm:$0xff]  ;;  %s5182_s25 = smov (!%p552_p3, %s3885_s25), 1  ;;  %vm580_vm0 = vcmask 261120   ;;  %vm672_vm1 = vcmask 64512  }
   0xe   : > { %4156 = vmatprep.subr.mxu0 %v572_v0  ;;  %v569_v3 = vld [vmem:[%s5140_s2] sm:$0xff]  ;;  %s4017_s1 = sshll.u32 %s5182_s25, 4  ;;  %vm764_vm3 = vcmask 130048  }
   0xf   : > { %4157 = vmatpush3.msra.mxu0 %v572_v0  ;;  %s556_s23 = scalar_lea.vmem %s5172_s22, %s4017_s1  ;;  %v3894_v6 = vld [vmem:[%s5141_s3] ss:$0 sm:$0xff]  ;;  %s5166_s22 = smov 72  }
  0x10   : > { %4158 = vmatprep.subr.mxu0 %v571_v1  ;;  %v4651_v4 = vld [vmem:[%s556_s23] sm:$0xff]  ;;  %v4653_v5 = vld [vmem:[%s556_s23 + $0x8] sm:$0xff]  ;;  %s4697_s20 = scalar_lea.vmem %s5173_s19, %s4017_s1  ;;  %s4523_s1 = smov 112  }
  0x11   : > { %4159 = vmatpush3.msra.mxu0 %v571_v1  ;;  %4164 = vmatprep.mubr.msk.f32.mxu0 %vm580_vm0, %v4651_v4  ;;  %v4700_v19 = vld [vmem:[%s4697_s20 + $0x8] sm:$0xff]  ;;  %v4703_v22 = vld [vmem:[%s4697_s20] sm:$0xff]  ;;  %s5164_s23 = smov 80   ;;  %s5158_s19 = smov 40  }
  0x12   : > { %4160 = vmatprep.subr.mxu0 %v570_v2 }
  0x13   : > { %4161 = vmatpush3.msra.mxu0 %v570_v2 }
  0x14   : > { %4162 = vmatprep.subr.mxu0 %v569_v3 }
  0x15   : > { %4163 = vmatpush3.msra.mxu0 %v569_v3 }
  0x16   : > { %4165 = vmatmul.mubr.msk.f32.vlgmr.msra.gmra.mxu0 %vm580_vm0, %v4653_v5 }
  0xd6   : > { %v4166_v7 = vpop.f32.mrf.mxu0 }
  0xd7   : > { %v4662_v8 = vadd.f32 %v4166_v7, %v3894_v6 }
  0xd8   : > { %v653_v9 = vpop.f32.mrf.mxu0 }
  0xd9   : > { %v4664_v10 = vadd.f32 %v3894_v6, %v653_v9  ;;  %888 = vrot.lane.b32.xlu1 %v4662_v8, %s4520_s28  ;;  %670 = vrot.lane.b32.xlu0 %v4662_v8, %s4521_s29 }
  0xdb   : > { %4171 = vmatprep.mubr.msk.f32.mxu1 %vm672_vm1, %v4664_v10 }
  0xdd   : > { %886 = vrot.lane.b32.xlu1 %v4664_v10, %s4520_s28  ;;  %668 = vrot.lane.b32.xlu0 %v4664_v10, %s4521_s29 }
  0xe1   : > { %884 = vrot.lane.b32.xlu1 %v4662_v8, %s4522_s0  ;;  %882 = vrot.lane.b32.xlu0 %v4664_v10, %s4522_s0 }
 0x14b   : > { %v671_v11 = vpop.permute.xlu0 %670  ;;  %v889_v12 = vpop.permute.xlu1 %888 }
 0x14c   : > { %4167 = vmatprep.subr.msk.mxu1 %vm672_vm1, %v671_v11 }
 0x14d   : > { %4168 = vmatpush3.xpose.msk.msra.mxu1 %vm672_vm1, %v671_v11 }
 0x14f   : > { %v669_v13 = vpop.permute.xlu0 %668  ;;  %v887_v15 = vpop.permute.xlu1 %886 }
 0x150   : > { %4169 = vmatprep.subr.msk.mxu1 %vm672_vm1, %v669_v13 }
 0x151   : > { %4170 = vmatpush3.xpose.msk.msra.mxu1 %vm672_vm1, %v669_v13 }
 0x152   : > { %4181 = vmatprep.subr.msk.mxu1 %vm672_vm1, %v889_v12 }
 0x153   : > { %v883_v14 = vpop.permute.xlu0 %882  ;;  %v885_v16 = vpop.permute.xlu1 %884 }
 0x154   : > { %4172 = vmatmul.mubr.msk.f32.vlgmr.msra.gmra.mxu1 %vm672_vm1, %v4662_v8 }
 0x155   : > { %4182 = vmatpush3.xpose.msk.msra.mxu1 %vm672_vm1, %v889_v12  ;;  %4185 = vmatprep.mubr.msk.f32.mxu1 %vm672_vm1, %v883_v14 }
 0x156   : > { %4183 = vmatprep.subr.msk.mxu1 %vm672_vm1, %v887_v15 }
 0x159   : > { %4184 = vmatpush3.xpose.msk.msra.mxu1 %vm672_vm1, %v887_v15 }
 0x15c   : > { %4186 = vmatmul.mubr.msk.f32.vlgmr.msra.gmra.mxu1 %vm672_vm1, %v885_v16 }
 0x214   : > { %v4173_v17 = vpop.f32.mrf.mxu1 }
 0x215   : > { %v757_v18 = vmul.f32 0.35355338, %v4173_v17  ;;  %v663_v17 = vld [vmem:[%s5142_s4 + $0x8] sm:$0xff] }
 0x216   : > { %v747_v20 = vpop.f32.mrf.mxu1 }
 0x217   : > { %vm759_vm2 = vcmp.eq.f32.partialorder %v757_v18, 0.0  ;;  %v756_v21 = vmul.f32 0.35355338, %v747_v20 }
 0x218   : > { %v761_v23 = vsel %vm759_vm2, -inf, %v757_v18 }
 0x219   : > { %vm758_vm4 = vcmp.eq.f32.partialorder %v756_v21, 0.0  ;;  %v763_v24 = vadd.f32 %v761_v23, %v4700_v19 }
 0x21a   : > { %v760_v25 = vsel %vm758_vm4, -inf, %v756_v21 }
 0x21b   : > { %v768_v26 = vsel %vm764_vm3, %v763_v24, -inf  ;;  %v762_v27 = vadd.f32 %v760_v25, %v4703_v22 }
 0x21c   : > { %769 = vmax.xlane.f32.xlu1 %v768_v26  ;;  %v4187_v28 = vpop.f32.mrf.mxu1 }
 0x21d   : > { %v974_v29 = vmul.f32 0.35355338, %v4187_v28  ;;  %v765_v30 = vsel %vm764_vm3, %v762_v27, -inf }
 0x21e   : > { %v964_v31 = vpop.f32.mrf.mxu1  ;;  %766 = vmax.xlane.f32.xlu0 %v765_v30 }
 0x21f   : > { %vm976_vm5 = vcmp.eq.f32.partialorder %v974_v29, 0.0  ;;  %v973_v32 = vmul.f32 0.35355338, %v964_v31 }
 0x220   : > { %v978_v33 = vsel %vm976_vm5, -inf, %v974_v29 }
 0x221   : > { %vm975_vm6 = vcmp.eq.f32.partialorder %v973_v32, 0.0  ;;  %v980_v37 = vadd.f32 %v978_v33, %v4700_v19 }
 0x222   : > { %v977_v34 = vsel %vm975_vm6, -inf, %v973_v32 }
 0x223   : > { %v979_v35 = vadd.f32 %v977_v34, %v4703_v22  ;;  %v984_v38 = vsel %vm764_vm3, %v980_v37, -inf }
 0x225   : > { %v981_v36 = vsel %vm764_vm3, %v979_v35, -inf }
 0x226   : > { %982 = vmax.xlane.f32.xlu0 %v981_v36 }
 0x22a   : > { %985 = vmax.xlane.f32.xlu0 %v984_v38 }
 0x22d   : > { %797 = vrot.lane.b32.xlu1 %v4662_v8, %s4523_s1 }
 0x2a5   : > { %v770_v39 = vpop.xlane.xlu1 %769 }
 0x2a6   : > { %vm772_vm7 = vcmp.eq.f32.partialorder %v770_v39, -inf }
 0x2a7   : > { %v774_v40 = vsel %vm772_vm7, 0.0, %v770_v39  ;;  %v767_v41 = vpop.xlane.xlu0 %766 }
 0x2a8   : > { %v776_v42 = vsub.f32 %v763_v24, %v774_v40  ;;  %vm771_vm8 = vcmp.eq.f32.partialorder %v767_v41, -inf }
 0x2a9   : > { %v773_v43 = vsel %vm771_vm8, 0.0, %v767_v41  ;;  %v798_v44 = vpop.permute.xlu1 %797 }
 0x2aa   : > { %v779_v45 = vmul.f32 1.442695, %v776_v42  ;;  %v775_v46 = vsub.f32 %v762_v27, %v773_v43  ;;  %4174 = vmatprep.subr.mxu0 %v798_v44  ;;  %v662_v27 = vld [vmem:[%s5142_s4] sm:$0xff] }
 0x2ab   : > { %4175 = vmatpush3.msra.mxu0 %v798_v44  ;;  %4200 = vmatprep.subr.mxu1 %v662_v27 }
 0x2ac   : > { %4422 = vpow2.f32 %v779_v45  ;;  %v777_v47 = vmul.f32 1.442695, %v775_v46  ;;  %4201 = vmatpush3.msra.mxu1 %v662_v27  ;;  %v664_v27 = vld [vmem:[%s5142_s4 + $0x10] sm:$0xff] }
 0x2ae   : > { %4424 = vpow2.f32 %v777_v47 }
 0x2af   : > { %v983_v48 = vpop.xlane.xlu0 %982 }
 0x2b0   : > { %vm987_vm10 = vcmp.eq.f32.partialorder %v983_v48, -inf }
 0x2b1   : > { %v989_v59 = vsel %vm987_vm10, 0.0, %v983_v48 }
 0x2b2   : > { %v991_v60 = vsub.f32 %v979_v35, %v989_v59 }
 0x2b3   : > { %v986_v49 = vpop.xlane.xlu0 %985 }
 0x2b4   : > { %vm988_vm9 = vcmp.eq.f32.partialorder %v986_v49, -inf  ;;  %v993_v61 = vmul.f32 1.442695, %v991_v60 }
 0x2b5   : > { %v990_v50 = vsel %vm988_vm9, 0.0, %v986_v49 }
 0x2b6   : > { %v992_v51 = vsub.f32 %v980_v37, %v990_v50 }
 0x2b8   : > { %v995_v52 = vmul.f32 1.442695, %v992_v51 }
 0x2b9   : > { %v4423_v53 = vpop.eup %4422 }
 0x2ba   : > { %4426 = vpow2.f32 %v995_v52  ;;  %v784_v54 = vsel %vm764_vm3, %v4423_v53, 0.0 }
 0x2bb   : > { %v4425_v55 = vpop.eup %4424  ;;  %785 = vadd.xlane.f32.xlu0 %v784_v54  ;;  %4428 = vpow2.f32 %v993_v61 }
 0x2bc   : > { %v781_v56 = vsel %vm764_vm3, %v4425_v55, 0.0 }
 0x2bd   : > { %782 = vadd.xlane.f32.xlu1 %v781_v56 }
 0x2c7   : > { %v4717_v57 = vpop.eup %4426 }
 0x2c8   : > { %v1000_v58 = vsel %vm764_vm3, %v4717_v57, 0.0  ;;  %v4429_v62 = vpop.eup %4428 }
 0x2c9   : > { %1001 = vadd.xlane.f32.xlu0 %v1000_v58  ;;  %v997_v63 = vsel %vm764_vm3, %v4429_v62, 0.0 }
 0x2ce   : > { %1013 = vrot.lane.b32.xlu1 %v4662_v8, %s5168_s21 }
 0x2df   : > { %795 = vrot.lane.b32.xlu0 %v4664_v10, %s4523_s1 }
 0x2e3   : > { %1266 = vrot.lane.b32.xlu0 %v4662_v8, %s5166_s22 }
 0x2e7   : > { %1260 = vrot.lane.b32.xlu0 %v4664_v10, %s5164_s23 }
 0x2eb   : > { %1565 = vrot.lane.b32.xlu0 %v4662_v8, %s5162_s26 }
 0x2ef   : > { %1559 = vrot.lane.b32.xlu0 %v4664_v10, %s5160_s27 }
 0x2f2   : > { %998 = vadd.xlane.f32.xlu1 %v997_v63 }
 0x303   : > { %1011 = vrot.lane.b32.xlu1 %v4664_v10, %s5168_s21  ;;  %s5179_s21 = smov 64  }
 0x307   : > { %1264 = vrot.lane.b32.xlu1 %v4664_v10, %s5166_s22  ;;  %s5180_s22 = smov 40  }
 0x30b   : > { %1262 = vrot.lane.b32.xlu1 %v4662_v8, %s5164_s23 }
 0x30f   : > { %1563 = vrot.lane.b32.xlu1 %v4664_v10, %s5162_s26 }
 0x313   : > { %1561 = vrot.lane.b32.xlu1 %v4662_v8, %s5160_s27 }
 0x344   : > { %v786_v0 = vpop.xlane.xlu0 %785 }
 0x345   : > { %4430 = vrcp.f32 %v786_v0  ;;  %vm788_vm11 = vcmp.gt.f32.partialorder %v786_v0, 0.0 }
 0x346   : > { %v783_v1 = vpop.xlane.xlu1 %782 }
 0x347   : > { %4432 = vrcp.f32 %v783_v1  ;;  %vm787_vm12 = vcmp.gt.f32.partialorder %v783_v1, 0.0 }
 0x34a   : > { %v1014_v14 = vpop.permute.xlu1 %1013 }
 0x352   : > { %v4431_v2 = vpop.eup %4430  ;;  %v1002_v3 = vpop.xlane.xlu0 %1001 }
 0x353   : > { %v792_v7 = vsel %vm788_vm11, %v4431_v2, 0.0  ;;  %4434 = vrcp.f32 %v1002_v3  ;;  %vm1004_vm13 = vcmp.gt.f32.partialorder %v1002_v3, 0.0 }
 0x354   : > { %v4433_v6 = vpop.eup %4432  ;;  %v794_v13 = vmul.f32 %v4423_v53, %v792_v7 }
 0x355   : > { %v791_v9 = vsel %vm787_vm12, %v4433_v6, 0.0 }
 0x356   : > { %v793_v11 = vmul.f32 %v4425_v55, %v791_v9  ;;  %v796_v12 = vpop.permute.xlu0 %795 }
 0x357   : > { %4176 = vmatprep.subr.mxu0 %v796_v12 }
 0x358   : > { %4177 = vmatpush3.msra.mxu0 %v796_v12  ;;  %4178 = vmatprep.mubr.msk.f32.mxu0 %vm764_vm3, %v793_v11 }
 0x359   : > { %4179 = vmatmul.mubr.msk.f32.vlgmr.msra.gmra.mxu0 %vm764_vm3, %v794_v13  ;;  %4188 = vmatprep.subr.mxu0 %v1014_v14 }
 0x35a   : > { %4189 = vmatpush3.msra.mxu0 %v1014_v14  ;;  %v1267_v26 = vpop.permute.xlu0 %1266 }
 0x35e   : > { %v1261_v30 = vpop.permute.xlu0 %1260 }
 0x360   : > { %v4435_v18 = vpop.eup %4434 }
 0x361   : > { %v1008_v21 = vsel %vm1004_vm13, %v4435_v18, 0.0 }
 0x362   : > { %v1010_v25 = vmul.f32 %v4717_v57, %v1008_v21  ;;  %v1566_v34 = vpop.permute.xlu0 %1565 }
 0x366   : > { %v1560_v36 = vpop.permute.xlu0 %1559 }
 0x37b   : > { %v999_v15 = vpop.xlane.xlu1 %998 }
 0x37c   : > { %4436 = vrcp.f32 %v999_v15  ;;  %vm1003_vm14 = vcmp.gt.f32.partialorder %v999_v15, 0.0 }
 0x37f   : > { %v1012_v16 = vpop.permute.xlu1 %1011 }
 0x380   : > { %4190 = vmatprep.subr.mxu0 %v1012_v16 }
 0x381   : > { %4191 = vmatpush3.msra.mxu0 %v1012_v16 }
 0x382   : > { %4195 = vmatprep.subr.mxu0 %v663_v17 }
 0x383   : > { %v1265_v32 = vpop.permute.xlu1 %1264 }
 0x387   : > { %v1263_v35 = vpop.permute.xlu1 %1262 }
 0x389   : > { %v4437_v20 = vpop.eup %4436 }
 0x38a   : > { %v1007_v23 = vsel %vm1003_vm14, %v4437_v20, 0.0  ;;  %vm2031_vm14 = vcmask 523264  }
 0x38b   : > { %v1009_v24 = vmul.f32 %v4429_v62, %v1007_v23  ;;  %v1564_v37 = vpop.permute.xlu1 %1563 }
 0x38d   : > { %4192 = vmatprep.mubr.msk.f32.mxu0 %vm764_vm3, %v1009_v24 }
 0x38e   : > { %4193 = vmatmul.mubr.msk.f32.vlgmr.msra.gmra.mxu0 %vm764_vm3, %v1010_v25 }
 0x38f   : > { %4196 = vmatpush3.msra.mxu0 %v663_v17  ;;  %v1562_v38 = vpop.permute.xlu1 %1561 }
 0x390   : > { %4205 = vmatprep.subr.msk.mxu0 %vm672_vm1, %v1267_v26 }
 0x419   : > { %v4180_v28 = vpop.f32.mrf.mxu0 }
 0x41b   : > { %v873_v29 = vpop.f32.mrf.mxu0 }
 0x41c   : > { %4202 = vmatprep.mubr.msk.f32.mxu1 %vm672_vm1, %v873_v29 }
 0x41d   : > { %4203 = vmatmul.mubr.msk.f32.vlgmr.msra.gmra.mxu1 %vm672_vm1, %v4180_v28 }
 0x44e   : > { %v4194_v31 = vpop.f32.mrf.mxu0 }
 0x450   : > { %v1089_v33 = vpop.f32.mrf.mxu0 }
 0x451   : > { %4197 = vmatprep.mubr.msk.f32.mxu0 %vm672_vm1, %v1089_v33 }
 0x452   : > { %4198 = vmatmul.mubr.msk.f32.vlgmr.msra.gmra.mxu0 %vm672_vm1, %v4194_v31 }
 0x453   : > { %4206 = vmatpush3.xpose.msk.msra.mxu0 %vm672_vm1, %v1267_v26  ;;  %4209 = vmatprep.mubr.msk.f32.mxu0 %vm672_vm1, %v1261_v30 }
 0x454   : > { %4207 = vmatprep.subr.msk.mxu0 %vm672_vm1, %v1265_v32 }
 0x457   : > { %4208 = vmatpush3.xpose.msk.msra.mxu0 %vm672_vm1, %v1265_v32 }
 0x458   : > { %4224 = vmatprep.subr.msk.mxu0 %vm672_vm1, %v1566_v34 }
 0x45a   : > { %4210 = vmatmul.mubr.msk.f32.vlgmr.msra.gmra.mxu0 %vm672_vm1, %v1263_v35 }
 0x45b   : > { %4225 = vmatpush3.xpose.msk.msra.mxu0 %vm672_vm1, %v1566_v34  ;;  %4228 = vmatprep.mubr.msk.f32.mxu0 %vm672_vm1, %v1560_v36 }
 0x45c   : > { %4226 = vmatprep.subr.msk.mxu0 %vm672_vm1, %v1564_v37 }
 0x45f   : > { %4227 = vmatpush3.xpose.msk.msra.mxu0 %vm672_vm1, %v1564_v37 }
 0x462   : > { %4229 = vmatmul.mubr.msk.f32.vlgmr.msra.gmra.mxu0 %vm672_vm1, %v1562_v38 }
 0x4dd   : > { %v4204_v39 = vpop.f32.mrf.mxu1 }
 0x512   : > { %v4199_v40 = vpop.f32.mrf.mxu0 }
 0x513   : > { %v4771_v41 = vadd.f32 %v4204_v39, %v4199_v40 }
 0x514   : > { %v4773_v42 = vpop.f32.mrf.mxu0 }
 0x51a   : > { %v4211_v43 = vpop.f32.mrf.mxu0 }
 0x51b   : > { %v1352_v44 = vmul.f32 0.35355338, %v4211_v43 }
 0x51c   : > { %v1342_v45 = vpop.f32.mrf.mxu0 }
 0x51d   : > { %vm1354_vm15 = vcmp.eq.f32.partialorder %v1352_v44, 0.0  ;;  %v1351_v46 = vmul.f32 0.35355338, %v1342_v45 }
 0x51e   : > { %v1356_v47 = vsel %vm1354_vm15, -inf, %v1352_v44  ;;  %v1251_v44 = vpop.f32.mrf.mxu1 }
 0x51f   : > { %vm1353_vm2 = vcmp.eq.f32.partialorder %v1351_v46, 0.0  ;;  %v1358_v48 = vadd.f32 %v1356_v47, %v4700_v19 }
 0x520   : > { %v1355_v49 = vsel %vm1353_vm2, -inf, %v1351_v46 }
 0x521   : > { %v1362_v50 = vsel %vm764_vm3, %v1358_v48, -inf  ;;  %v1357_v51 = vadd.f32 %v1355_v49, %v4703_v22 }
 0x522   : > { %1363 = vmax.xlane.f32.xlu1 %v1362_v50  ;;  %v4230_v53 = vpop.f32.mrf.mxu0 }
 0x523   : > { %v1359_v52 = vsel %vm764_vm3, %v1357_v51, -inf  ;;  %v1651_v16 = vmul.f32 0.35355338, %v4230_v53  ;;  %v665_v53 = vld [vmem:[%s5142_s4 + $0x18] sm:$0xff] }
 0x524   : > { %1360 = vmax.xlane.f32.xlu0 %v1359_v52  ;;  %v1641_v54 = vpop.f32.mrf.mxu0 }
 0x525   : > { %v1650_v55 = vmul.f32 0.35355338, %v1641_v54  ;;  %vm1653_vm8 = vcmp.eq.f32.partialorder %v1651_v16, 0.0 }
 0x526   : > { %v1655_v17 = vsel %vm1653_vm8, -inf, %v1651_v16 }
 0x527   : > { %vm1652_vm4 = vcmp.eq.f32.partialorder %v1650_v55, 0.0  ;;  %v1657_v21 = vadd.f32 %v1655_v17, %v4700_v19 }
 0x528   : > { %v1654_v56 = vsel %vm1652_vm4, -inf, %v1650_v55  ;;  %v1252_v55 = vadd.f32 %v1251_v44, %v4773_v42  ;;  %v2020_v44 = vld [vmem:[%s5148_s10 + $0x20] sm:$0xff] }
 0x529   : > { %v1656_v57 = vadd.f32 %v1654_v56, %v4703_v22  ;;  %v1661_v23 = vsel %vm764_vm3, %v1657_v21, -inf }
 0x52b   : > { %v1658_v58 = vsel %vm764_vm3, %v1656_v57, -inf }
 0x533   : > { %1391 = vrot.lane.b32.xlu1 %v4662_v8, %s5156_s18 }
 0x557   : > { %1659 = vmax.xlane.f32.xlu1 %v1658_v58 }
 0x5ab   : > { %v1364_v59 = vpop.xlane.xlu1 %1363 }
 0x5ac   : > { %vm1366_vm5 = vcmp.eq.f32.partialorder %v1364_v59, -inf }
 0x5ad   : > { %v1368_v60 = vsel %vm1366_vm5, 0.0, %v1364_v59  ;;  %v1361_v61 = vpop.xlane.xlu0 %1360 }
 0x5ae   : > { %v1370_v62 = vsub.f32 %v1358_v48, %v1368_v60  ;;  %vm1365_vm6 = vcmp.eq.f32.partialorder %v1361_v61, -inf }
 0x5af   : > { %v1367_v63 = vsel %vm1365_vm6, 0.0, %v1361_v61  ;;  %v1392_v0 = vpop.permute.xlu1 %1391 }
 0x5b0   : > { %v1373_v1 = vmul.f32 1.442695, %v1370_v62  ;;  %v1369_v2 = vsub.f32 %v1357_v51, %v1367_v63  ;;  %4212 = vmatprep.subr.mxu1 %v1392_v0  ;;  %v3929_v62 = vld [vmem:[%s5143_s5] ss:$0 sm:$0xff] }
 0x5b1   : > { %4213 = vmatpush3.msra.mxu1 %v1392_v0 }
 0x5b2   : > { %4438 = vpow2.f32 %v1373_v1  ;;  %v1371_v3 = vmul.f32 1.442695, %v1369_v2 }
 0x5b4   : > { %4440 = vpow2.f32 %v1371_v3 }
 0x5bf   : > { %v4439_v6 = vpop.eup %4438 }
 0x5c0   : > { %v1378_v7 = vsel %vm764_vm3, %v4439_v6, 0.0 }
 0x5c1   : > { %v4441_v9 = vpop.eup %4440  ;;  %1379 = vadd.xlane.f32.xlu0 %v1378_v7 }
 0x5c2   : > { %v1375_v11 = vsel %vm764_vm3, %v4441_v9, 0.0 }
 0x5c5   : > { %1376 = vadd.xlane.f32.xlu0 %v1375_v11 }
 0x5db   : > { %1389 = vrot.lane.b32.xlu0 %v4664_v10, %s5156_s18  ;;  %s5176_s18 = smov 80  }
 0x5e0   : > { %v1660_v12 = vpop.xlane.xlu1 %1659 }
 0x5e1   : > { %vm1664_vm7 = vcmp.eq.f32.partialorder %v1660_v12, -inf }
 0x5e2   : > { %v1666_v13 = vsel %vm1664_vm7, 0.0, %v1660_v12 }
 0x5e3   : > { %v1668_v14 = vsub.f32 %v1656_v57, %v1666_v13 }
 0x5e5   : > { %v1670_v15 = vmul.f32 1.442695, %v1668_v14 }
 0x5e7   : > { %4442 = vpow2.f32 %v1670_v15 }
 0x5f4   : > { %v4443_v18 = vpop.eup %4442 }
 0x5f5   : > { %v1674_v20 = vsel %vm764_vm3, %v4443_v18, 0.0 }
 0x5f6   : > { %1675 = vadd.xlane.f32.xlu1 %v1674_v20  ;;  %v1916_v20 = vld [vmem:[%s5146_s8 + $0x10] sm:$0xff] }
 0x5fa   : > { %1662 = vmax.xlane.f32.xlu0 %v1661_v23  ;;  %v1914_v23 = vld [vmem:[%s5146_s8] sm:$0xff] }
 0x607   : > { %1690 = vrot.lane.b32.xlu1 %v4662_v8, %s5158_s19 }
 0x64a   : > { %v1380_v24 = vpop.xlane.xlu0 %1379 }
 0x64b   : > { %4444 = vrcp.f32 %v1380_v24  ;;  %vm1382_vm9 = vcmp.gt.f32.partialorder %v1380_v24, 0.0 }
 0x64e   : > { %v1377_v25 = vpop.xlane.xlu0 %1376 }
 0x64f   : > { %4446 = vrcp.f32 %v1377_v25  ;;  %vm1381_vm10 = vcmp.gt.f32.partialorder %v1377_v25, 0.0 }
 0x652   : > { %v1390_v26 = vpop.permute.xlu0 %1389 }
 0x653   : > { %4214 = vmatprep.subr.mxu1 %v1390_v26 }
 0x654   : > { %4215 = vmatpush3.msra.mxu1 %v1390_v26 }
 0x655   : > { %4219 = vmatprep.subr.mxu1 %v664_v27 }
 0x658   : > { %v4445_v28 = vpop.eup %4444 }
 0x659   : > { %v1386_v30 = vsel %vm1382_vm9, %v4445_v28, 0.0 }
 0x65a   : > { %v1388_v8 = vmul.f32 %v4439_v6, %v1386_v30 }
 0x65c   : > { %v4447_v29 = vpop.eup %4446 }
 0x65d   : > { %v1385_v31 = vsel %vm1381_vm10, %v4447_v29, 0.0 }
 0x65e   : > { %v1387_v32 = vmul.f32 %v4441_v9, %v1385_v31  ;;  %v3930_v31 = vld [vmem:[%s5144_s6] ss:$0 sm:$0xff] }
 0x660   : > { %4216 = vmatprep.mubr.msk.f32.mxu1 %vm764_vm3, %v1387_v32 }
 0x661   : > { %4217 = vmatmul.mubr.msk.f32.vlgmr.msra.gmra.mxu1 %vm764_vm3, %v1388_v8 }
 0x662   : > { %4220 = vmatpush3.msra.mxu1 %v664_v27 }
 0x67f   : > { %v1676_v33 = vpop.xlane.xlu1 %1675 }
 0x680   : > { %vm1680_vm12 = vcmp.gt.f32.partialorder %v1676_v33, 0.0 }
 0x683   : > { %v1691_v34 = vpop.permute.xlu1 %1690  ;;  %v1663_v35 = vpop.xlane.xlu0 %1662 }
 0x684   : > { %vm1665_vm11 = vcmp.eq.f32.partialorder %v1663_v35, -inf  ;;  %4231 = vmatprep.subr.mxu1 %v1691_v34 }
 0x685   : > { %v1667_v36 = vsel %vm1665_vm11, 0.0, %v1663_v35  ;;  %v3931_v35 = vld [vmem:[%s5145_s7] ss:$0 sm:$0xff] }
 0x686   : > { %v1669_v37 = vsub.f32 %v1657_v21, %v1667_v36  ;;  %v1915_v21 = vld [vmem:[%s5146_s8 + $0x8] sm:$0xff] }
 0x688   : > { %v1672_v38 = vmul.f32 1.442695, %v1669_v37 }
 0x68a   : > { %4448 = vpow2.f32 %v1672_v38 }
 0x68b   : > { %4450 = vrcp.f32 %v1676_v33 }
 0x697   : > { %v4449_v39 = vpop.eup %4448 }
 0x698   : > { %v1677_v40 = vsel %vm764_vm3, %v4449_v39, 0.0  ;;  %v4451_v43 = vpop.eup %4450 }
 0x699   : > { %1678 = vadd.xlane.f32.xlu0 %v1677_v40  ;;  %v1684_v45 = vsel %vm1680_vm12, %v4451_v43, 0.0  ;;  %v2022_v40 = vld [vmem:[%s5148_s10 + $0x30] sm:$0xff]  ;;  %v2021_v43 = vld [vmem:[%s5148_s10 + $0x28] sm:$0xff] }
 0x69a   : > { %v1686_v49 = vmul.f32 %v4443_v18, %v1684_v45  ;;  %v2019_v45 = vld [vmem:[%s5148_s10 + $0x18] sm:$0xff] }
 0x6af   : > { %1688 = vrot.lane.b32.xlu0 %v4664_v10, %s5158_s19 }
 0x721   : > { %v4218_v46 = vpop.f32.mrf.mxu1 }
 0x722   : > { %v1679_v47 = vpop.xlane.xlu0 %1678 }
 0x723   : > { %4452 = vrcp.f32 %v1679_v47  ;;  %v1467_v48 = vpop.f32.mrf.mxu1  ;;  %vm1681_vm13 = vcmp.gt.f32.partialorder %v1679_v47, 0.0  ;;  %v2017_v47 = vld [vmem:[%s5148_s10 + $0x8] sm:$0xff] }
 0x724   : > { %4221 = vmatprep.mubr.msk.f32.mxu1 %vm672_vm1, %v1467_v48  ;;  %v2016_v48 = vld [vmem:[%s5148_s10] sm:$0xff] }
 0x725   : > { %4222 = vmatmul.mubr.msk.f32.vlgmr.msra.gmra.mxu1 %vm672_vm1, %v4218_v46  ;;  %v2018_v46 = vld [vmem:[%s5148_s10 + $0x10] sm:$0xff] }
 0x726   : > { %4232 = vmatpush3.msra.mxu1 %v1691_v34  ;;  %4235 = vmatprep.mubr.msk.f32.mxu1 %vm764_vm3, %v1686_v49  ;;  %v1689_v50 = vpop.permute.xlu0 %1688  ;;  %v3932_v49 = vld [vmem:[%s5147_s9] ss:$0 sm:$0xff] }
 0x727   : > { %4233 = vmatprep.subr.mxu1 %v1689_v50 }
 0x728   : > { %4234 = vmatpush3.msra.mxu1 %v1689_v50 }
 0x729   : > { %4238 = vmatprep.subr.mxu1 %v665_v53 }
 0x730   : > { %v4453_v10 = vpop.eup %4452 }
 0x731   : > { %v1685_v51 = vsel %vm1681_vm13, %v4453_v10, 0.0 }
 0x732   : > { %v1687_v52 = vmul.f32 %v4449_v39, %v1685_v51  ;;  %v2023_v39 = vld [vmem:[%s5148_s10 + $0x38] sm:$0xff] }
 0x734   : > { %4236 = vmatmul.mubr.msk.f32.vlgmr.msra.gmra.mxu1 %vm764_vm3, %v1687_v52 }
 0x735   : > { %4239 = vmatpush3.msra.mxu1 %v665_v53 }
 0x736   : > { %4254 = vmatprep.subr.mxu1 %v2023_v39 }
 0x7e5   : > { %v4223_v54 = vpop.f32.mrf.mxu1 }
 0x7e6   : > { %v1558_v56 = vadd.f32 %v4223_v54, %v4771_v41 }
 0x7e7   : > { %v1548_v57 = vpop.f32.mrf.mxu1 }
 0x7e8   : > { %v1557_v58 = vadd.f32 %v1548_v57, %v1252_v55 }
 0x7f4   : > { %v4237_v59 = vpop.f32.mrf.mxu1 }
 0x7f6   : > { %v1766_v60 = vpop.f32.mrf.mxu1 }
 0x7f7   : > { %4240 = vmatprep.mubr.msk.f32.mxu1 %vm672_vm1, %v1766_v60 }
 0x7f8   : > { %4241 = vmatmul.mubr.msk.f32.vlgmr.msra.gmra.mxu1 %vm672_vm1, %v4237_v59 }
 0x7f9   : > { %4255 = vmatpush3.msra.mxu1 %v2023_v39  ;;  %v3945_v39 = vld [vmem:[%s5141_s3 + $0x1] ss:$0 sm:$0xff] }
 0x7fa   : > { %4256 = vmatprep.subr.mxu1 %v2022_v40 }
 0x7fb   : > { %4257 = vmatpush3.msra.mxu1 %v2022_v40 }
 0x7fc   : > { %4258 = vmatprep.subr.mxu1 %v2021_v43 }
 0x7fd   : > { %4259 = vmatpush3.msra.mxu1 %v2021_v43 }
 0x7fe   : > { %4260 = vmatprep.subr.mxu1 %v2020_v44 }
 0x7ff   : > { %4261 = vmatpush3.msra.mxu1 %v2020_v44 }
 0x800   : > { %4262 = vmatprep.subr.mxu1 %v2019_v45 }
 0x801   : > { %4263 = vmatpush3.msra.mxu1 %v2019_v45 }
 0x802   : > { %4264 = vmatprep.subr.mxu1 %v2018_v46 }
 0x803   : > { %4265 = vmatpush3.msra.mxu1 %v2018_v46 }
 0x804   : > { %4266 = vmatprep.subr.mxu1 %v2017_v47 }
 0x805   : > { %4267 = vmatpush3.msra.mxu1 %v2017_v47 }
 0x806   : > { %4268 = vmatprep.subr.mxu1 %v2016_v48 }
 0x807   : > { %4269 = vmatpush3.msra.mxu1 %v2016_v48 }
 0x8b8   : > { %v4242_v61 = vpop.f32.mrf.mxu1 }
 0x8b9   : > { %v1857_v63 = vadd.f32 %v4242_v61, %v1558_v56 }
 0x8ba   : > { %v1847_v0 = vpop.f32.mrf.mxu1 }
 0x8bb   : > { %v1866_v1 = vadd.f32 %v3929_v62, %v1857_v63  ;;  %v1856_v2 = vadd.f32 %v1847_v0, %v1557_v58  ;;  %v3935_v63 = vld [vmem:[%s5149_s11] ss:$0 sm:$0xff] }
 0x8bd   : > { %v1865_v42 = vadd.f32 %v3929_v62, %v1856_v2  ;;  %v1868_v41 = vadd.f32 %v1866_v1, %v4653_v5 }
 0x8bf   : > { %v1874_v3 = vsel %vm580_vm0, %v1868_v41, 0.0  ;;  %v1867_v6 = vadd.f32 %v1865_v42, %v4651_v4  ;;  %v1917_v4 = vld [vmem:[%s5146_s8 + $0x18] sm:$0xff] }
 0x8c0   : > { %1875 = vadd.xlane.f32.xlu0 %v1874_v3  ;;  %4243 = vmatprep.subr.mxu0 %v1917_v4 }
 0x8c1   : > { %v1871_v7 = vsel %vm580_vm0, %v1867_v6, 0.0  ;;  %4244 = vmatpush3.msra.mxu0 %v1917_v4  ;;  %v3943_v4 = vld [vmem:[%s5140_s2 + $0x38] sm:$0xff] }
 0x8c2   : > { %1872 = vadd.xlane.f32.xlu1 %v1871_v7  ;;  %4245 = vmatprep.subr.mxu0 %v1916_v20 }
 0x8c3   : > { %4246 = vmatpush3.msra.mxu0 %v1916_v20  ;;  %v3942_v20 = vld [vmem:[%s5140_s2 + $0x30] sm:$0xff] }
 0x8c4   : > { %4247 = vmatprep.subr.mxu0 %v1915_v21 }
 0x8c5   : > { %4248 = vmatpush3.msra.mxu0 %v1915_v21  ;;  %v3941_v21 = vld [vmem:[%s5140_s2 + $0x28] sm:$0xff] }
 0x8c6   : > { %4249 = vmatprep.subr.mxu0 %v1914_v23 }
 0x8c7   : > { %4250 = vmatpush3.msra.mxu0 %v1914_v23  ;;  %v3940_v23 = vld [vmem:[%s5140_s2 + $0x20] sm:$0xff] }
 0x8c8   : > { %4273 = vmatprep.subr.mxu0 %v3943_v4 }
 0x949   : > { %v1876_v9 = vpop.xlane.xlu0 %1875 }
 0x94a   : > { %v1879_v11 = vmul.f32 0.03125, %v1876_v9 }
 0x94b   : > { %v1873_v12 = vpop.xlane.xlu1 %1872 }
 0x94c   : > { %v1881_v13 = vsub.f32 %v1868_v41, %v1879_v11  ;;  %v1878_v14 = vmul.f32 0.03125, %v1873_v12 }
 0x94e   : > { %v1880_v15 = vsub.f32 %v1867_v6, %v1878_v14  ;;  %v1883_v16 = vmul.f32 %v1881_v13, %v1881_v13 }
 0x950   : > { %v1887_v17 = vsel %vm580_vm0, %v1883_v16, 0.0  ;;  %v1882_v18 = vmul.f32 %v1880_v15, %v1880_v15 }
 0x951   : > { %1888 = vadd.xlane.f32.xlu0 %v1887_v17 }
 0x952   : > { %v1884_v5 = vsel %vm580_vm0, %v1882_v18, 0.0 }
 0x953   : > { %1885 = vadd.xlane.f32.xlu1 %v1884_v5 }
 0x9da   : > { %v1889_v24 = vpop.xlane.xlu0 %1888 }
 0x9db   : > { %v1891_v25 = vmul.f32 0.03125, %v1889_v24 }
 0x9dc   : > { %v1886_v26 = vpop.xlane.xlu1 %1885 }
 0x9dd   : > { %v1893_v27 = vadd.f32 1e-05, %v1891_v25  ;;  %v1890_v28 = vmul.f32 0.03125, %v1886_v26 }
 0x9df   : > { %4454 = vrsqrt.f32 %v1893_v27  ;;  %v1892_v29 = vadd.f32 1e-05, %v1890_v28 }
 0x9e1   : > { %4456 = vrsqrt.f32 %v1892_v29 }
 0x9ec   : > { %v4455_v30 = vpop.eup %4454 }
 0x9ed   : > { %v1897_v32 = vmul.f32 %v4455_v30, %v1881_v13 }
 0x9ee   : > { %v4457_v8 = vpop.eup %4456 }
 0x9ef   : > { %v1896_v33 = vmul.f32 %v4457_v8, %v1880_v15  ;;  %v1905_v34 = vmul.f32 %v3930_v31, %v1897_v32 }
 0x9f1   : > { %v1904_v36 = vmul.f32 %v3930_v31, %v1896_v33  ;;  %v1913_v38 = vadd.f32 %v3931_v35, %v1905_v34  ;;  %v3938_v31 = vld [vmem:[%s5150_s12] ss:$0 sm:$0xff] }
 0x9f3   : > { %v1912_v37 = vadd.f32 %v3931_v35, %v1904_v36  ;;  %v3939_v35 = vld [vmem:[%s5151_s13] ss:$0 sm:$0xff] }
 0x9f5   : > { %4251 = vmatprep.mubr.msk.f32.mxu0 %vm580_vm0, %v1912_v37 }
 0x9f6   : > { %4252 = vmatmul.mubr.msk.f32.vlgmr.msra.gmra.mxu0 %vm580_vm0, %v1913_v38 }
 0x9f7   : > { %4274 = vmatpush3.msra.mxu0 %v3943_v4 }
 0x9f8   : > { %4275 = vmatprep.subr.mxu0 %v3942_v20 }
 0x9f9   : > { %4276 = vmatpush3.msra.mxu0 %v3942_v20 }
 0x9fa   : > { %4277 = vmatprep.subr.mxu0 %v3941_v21 }
 0x9fb   : > { %4278 = vmatpush3.msra.mxu0 %v3941_v21 }
 0x9fc   : > { %4279 = vmatprep.subr.mxu0 %v3940_v23 }
 0x9fd   : > { %4280 = vmatpush3.msra.mxu0 %v3940_v23 }
 0xab6   : > { %v4253_v50 = vpop.f32.mrf.mxu0 }
 0xab7   : > { %v2003_v10 = vadd.f32 %v4253_v50, %v3932_v49 }
 0xab8   : > { %v1997_v51 = vpop.f32.mrf.mxu0 }
 0xab9   : > { %v2009_v52 = vmul.f32 0.70710677, %v2003_v10  ;;  %v1998_v53 = vadd.f32 %v3932_v49, %v1997_v51  ;;  %v2007_v60 = vmul.f32 0.5, %v2003_v10 }
 0xabb   : > { %4458 = verf.f32 %v2009_v52  ;;  %v2008_v54 = vmul.f32 0.70710677, %v1998_v53  ;;  %v2006_v58 = vmul.f32 0.5, %v1998_v53 }
 0xabd   : > { %4460 = verf.f32 %v2008_v54 }
 0xac8   : > { %v4459_v55 = vpop.eup %4458 }
 0xac9   : > { %v2013_v57 = vadd.f32 1.0, %v4459_v55 }
 0xaca   : > { %v4461_v56 = vpop.eup %4460 }
 0xacb   : > { %v2012_v59 = vadd.f32 1.0, %v4461_v56  ;;  %v2015_v62 = vmul.f32 %v2013_v57, %v2007_v60 }
 0xacd   : > { %v2014_v61 = vmul.f32 %v2012_v59, %v2006_v58 }
 0xacf   : > { %4270 = vmatprep.mubr.msk.f32.mxu1 %vm2031_vm14, %v2014_v61 }
 0xad0   : > { %4271 = vmatmul.mubr.msk.f32.vlgmr.msra.gmra.mxu1 %vm2031_vm14, %v2015_v62 }
 0xb90   : > { %v4272_v0 = vpop.f32.mrf.mxu1 }
 0xb91   : > { %v2110_v1 = vadd.f32 %v4272_v0, %v3935_v63 }
 0xb92   : > { %v2104_v2 = vpop.f32.mrf.mxu1 }
 0xb93   : > { %v2105_v42 = vadd.f32 %v3935_v63, %v2104_v2  ;;  %v2114_v41 = vadd.f32 %v2110_v1, %v1913_v38 }
 0xb95   : > { %v2120_v3 = vsel %vm580_vm0, %v2114_v41, 0.0  ;;  %v2113_v6 = vadd.f32 %v2105_v42, %v1912_v37 }
 0xb96   : > { %2121 = vadd.xlane.f32.xlu0 %v2120_v3 }
 0xb97   : > { %v2117_v7 = vsel %vm580_vm0, %v2113_v6, 0.0 }
 0xb98   : > { %2118 = vadd.xlane.f32.xlu1 %v2117_v7 }
 0xc1f   : > { %v2122_v9 = vpop.xlane.xlu0 %2121 }
 0xc20   : > { %v2124_v11 = vmul.f32 0.03125, %v2122_v9 }
 0xc21   : > { %v2119_v12 = vpop.xlane.xlu1 %2118 }
 0xc22   : > { %v2126_v13 = vsub.f32 %v2114_v41, %v2124_v11  ;;  %v2123_v14 = vmul.f32 0.03125, %v2119_v12 }
 0xc24   : > { %v2125_v15 = vsub.f32 %v2113_v6, %v2123_v14  ;;  %v2128_v16 = vmul.f32 %v2126_v13, %v2126_v13 }
 0xc26   : > { %v2132_v17 = vsel %vm580_vm0, %v2128_v16, 0.0  ;;  %v2127_v18 = vmul.f32 %v2125_v15, %v2125_v15 }
 0xc27   : > { %2133 = vadd.xlane.f32.xlu0 %v2132_v17 }
 0xc28   : > { %v2129_v5 = vsel %vm580_vm0, %v2127_v18, 0.0 }
 0xc29   : > { %2130 = vadd.xlane.f32.xlu1 %v2129_v5  ;;  %v3948_v5 = vld [vmem:[%s5142_s4 + $0x20] sm:$0xff] }
 0xcb0   : > { %v2134_v24 = vpop.xlane.xlu0 %2133 }
 0xcb1   : > { %v2136_v25 = vmul.f32 0.03125, %v2134_v24 }
 0xcb2   : > { %v2131_v26 = vpop.xlane.xlu1 %2130 }
 0xcb3   : > { %v2138_v27 = vadd.f32 1e-05, %v2136_v25  ;;  %v2135_v28 = vmul.f32 0.03125, %v2131_v26 }
 0xcb5   : > { %4462 = vrsqrt.f32 %v2138_v27  ;;  %v2137_v29 = vadd.f32 1e-05, %v2135_v28  ;;  %v4953_v27 = vld [vmem:[%s4697_s20 + $0x8] sm:$0xff] }
 0xcb7   : > { %4464 = vrsqrt.f32 %v2137_v29 }
 0xcc2   : > { %v4463_v30 = vpop.eup %4462 }
 0xcc3   : > { %v2142_v32 = vmul.f32 %v4463_v30, %v2126_v13 }
 0xcc4   : > { %v4465_v8 = vpop.eup %4464 }
 0xcc5   : > { %v2141_v33 = vmul.f32 %v4465_v8, %v2125_v15  ;;  %v2150_v34 = vmul.f32 %v3938_v31, %v2142_v32 }
 0xcc7   : > { %v2149_v36 = vmul.f32 %v3938_v31, %v2141_v33  ;;  %v4896_v38 = vadd.f32 %v3939_v35, %v2150_v34  ;;  %v4958_v31 = vld [vmem:[%s4697_s20] sm:$0xff]  ;;  %s5177_s20 = smov 48  }
 0xcc9   : > { %v4894_v37 = vadd.f32 %v3939_v35, %v2149_v36 }
 0xccb   : > { %4281 = vmatprep.mubr.msk.f32.mxu0 %vm580_vm0, %v4894_v37 }
 0xccc   : > { %4282 = vmatmul.mubr.msk.f32.vlgmr.msra.gmra.mxu0 %vm580_vm0, %v4896_v38 }
 0xd8c   : > { %v4283_v40 = vpop.f32.mrf.mxu0 }
 0xd8d   : > { %v4905_v43 = vadd.f32 %v4283_v40, %v3945_v39 }
 0xd8e   : > { %v2244_v44 = vpop.f32.mrf.mxu0 }
 0xd8f   : > { %v4907_v45 = vadd.f32 %v3945_v39, %v2244_v44  ;;  %2262 = vrot.lane.b32.xlu1 %v4905_v43, %s4521_s29 }
 0xd91   : > { %2260 = vrot.lane.b32.xlu0 %v4907_v45, %s4521_s29  ;;  %4288 = vmatprep.mubr.msk.f32.mxu0 %vm672_vm1, %v4907_v45 }
 0xe01   : > { %v2263_v46 = vpop.permute.xlu1 %2262 }
 0xe02   : > { %4284 = vmatprep.subr.msk.mxu0 %vm672_vm1, %v2263_v46 }
 0xe03   : > { %4285 = vmatpush3.xpose.msk.msra.mxu0 %vm672_vm1, %v2263_v46  ;;  %v2261_v47 = vpop.permute.xlu0 %2260 }
 0xe04   : > { %4286 = vmatprep.subr.msk.mxu0 %vm672_vm1, %v2261_v47 }
 0xe07   : > { %4287 = vmatpush3.xpose.msk.msra.mxu0 %vm672_vm1, %v2261_v47 }
 0xe0a   : > { %4289 = vmatmul.mubr.msk.f32.vlgmr.msra.gmra.mxu0 %vm672_vm1, %v4905_v43 }
 0xeca   : > { %v4290_v48 = vpop.f32.mrf.mxu0 }
 0xecb   : > { %v2348_v49 = vmul.f32 0.35355338, %v4290_v48 }
 0xecc   : > { %v2338_v50 = vpop.f32.mrf.mxu0 }
 0xecd   : > { %vm2350_vm15 = vcmp.eq.f32.partialorder %v2348_v49, 0.0  ;;  %v2347_v10 = vmul.f32 0.35355338, %v2338_v50 }
 0xece   : > { %v2352_v51 = vsel %vm2350_vm15, -inf, %v2348_v49 }
 0xecf   : > { %vm2349_vm2 = vcmp.eq.f32.partialorder %v2347_v10, 0.0  ;;  %v2354_v52 = vadd.f32 %v2352_v51, %v4700_v19 }
 0xed0   : > { %v2351_v53 = vsel %vm2349_vm2, -inf, %v2347_v10 }
 0xed1   : > { %v2358_v54 = vsel %vm764_vm3, %v2354_v52, -inf  ;;  %v2353_v55 = vadd.f32 %v2351_v53, %v4703_v22 }
 0xed2   : > { %2359 = vmax.xlane.f32.xlu0 %v2358_v54  ;;  %v3949_v54 = vld [vmem:[%s5142_s4 + $0x28] sm:$0xff] }
 0xed3   : > { %v2355_v56 = vsel %vm764_vm3, %v2353_v55, -inf }
 0xed4   : > { %2356 = vmax.xlane.f32.xlu1 %v2355_v56 }
 0xee5   : > { %2387 = vrot.lane.b32.xlu1 %v4905_v43, %s4523_s1 }
 0xee9   : > { %2478 = vrot.lane.b32.xlu1 %v4905_v43, %s4520_s28 }
 0xf5b   : > { %v2360_v57 = vpop.xlane.xlu0 %2359 }
 0xf5c   : > { %vm2362_vm4 = vcmp.eq.f32.partialorder %v2360_v57, -inf }
 0xf5d   : > { %v2364_v58 = vsel %vm2362_vm4, 0.0, %v2360_v57  ;;  %v2357_v59 = vpop.xlane.xlu1 %2356 }
 0xf5e   : > { %v2366_v19 = vsub.f32 %v2354_v52, %v2364_v58  ;;  %vm2361_vm5 = vcmp.eq.f32.partialorder %v2357_v59, -inf }
 0xf5f   : > { %v2363_v60 = vsel %vm2361_vm5, 0.0, %v2357_v59 }
 0xf60   : > { %v2369_v61 = vmul.f32 1.442695, %v2366_v19  ;;  %v2365_v62 = vsub.f32 %v2353_v55, %v2363_v60 }
 0xf61   : > { %v2388_v22 = vpop.permute.xlu1 %2387 }
 0xf62   : > { %4466 = vpow2.f32 %v2369_v61  ;;  %v2367_v63 = vmul.f32 1.442695, %v2365_v62  ;;  %4291 = vmatprep.subr.mxu1 %v2388_v22 }
 0xf63   : > { %4292 = vmatpush3.msra.mxu1 %v2388_v22 }
 0xf64   : > { %4468 = vpow2.f32 %v2367_v63 }
 0xf65   : > { %v2479_v41 = vpop.permute.xlu1 %2478 }
 0xf6f   : > { %v4467_v0 = vpop.eup %4466 }
 0xf70   : > { %v2374_v1 = vsel %vm764_vm3, %v4467_v0, 0.0 }
 0xf71   : > { %v4469_v2 = vpop.eup %4468  ;;  %2375 = vadd.xlane.f32.xlu0 %v2374_v1 }
 0xf72   : > { %v2371_v42 = vsel %vm764_vm3, %v4469_v2, 0.0 }
 0xf73   : > { %2372 = vadd.xlane.f32.xlu1 %v2371_v42 }
 0xf84   : > { %2476 = vrot.lane.b32.xlu1 %v4907_v45, %s4520_s28 }
 0xf87   : > { %2385 = vrot.lane.b32.xlu0 %v4907_v45, %s4523_s1  ;;  %s5175_s1 = smov 72  }
 0xf88   : > { %2474 = vrot.lane.b32.xlu1 %v4905_v43, %s4522_s0 }
 0xf8b   : > { %2472 = vrot.lane.b32.xlu0 %v4907_v45, %s4522_s0  ;;  %s5174_s0 = smov 88  }
 0xffa   : > { %v2376_v3 = vpop.xlane.xlu0 %2375 }
 0xffb   : > { %4470 = vrcp.f32 %v2376_v3  ;;  %vm2378_vm6 = vcmp.gt.f32.partialorder %v2376_v3, 0.0 }
 0xffc   : > { %v2373_v6 = vpop.xlane.xlu1 %2372 }
 0xffd   : > { %4472 = vrcp.f32 %v2373_v6  ;;  %vm2377_vm7 = vcmp.gt.f32.partialorder %v2373_v6, 0.0 }
 0xffe   : > { %v2386_v7 = vpop.permute.xlu0 %2385 }
 0xfff   : > { %4293 = vmatprep.subr.mxu1 %v2386_v7 }
0x1000   : > { %4294 = vmatpush3.msra.mxu1 %v2386_v7  ;;  %v2477_v17 = vpop.permute.xlu1 %2476 }
0x1001   : > { %4298 = vmatprep.subr.msk.mxu1 %vm672_vm1, %v2479_v41 }
0x1002   : > { %v2473_v16 = vpop.permute.xlu0 %2472 }
0x1004   : > { %v2475_v18 = vpop.permute.xlu1 %2474 }
0x1008   : > { %v4471_v9 = vpop.eup %4470 }
0x1009   : > { %v2382_v12 = vsel %vm2378_vm6, %v4471_v9, 0.0 }
0x100a   : > { %v4473_v11 = vpop.eup %4472  ;;  %v2384_v15 = vmul.f32 %v4467_v0, %v2382_v12 }
0x100b   : > { %v2381_v13 = vsel %vm2377_vm7, %v4473_v11, 0.0 }
0x100c   : > { %v2383_v14 = vmul.f32 %v4469_v2, %v2381_v13 }
0x100e   : > { %4295 = vmatprep.mubr.msk.f32.mxu1 %vm764_vm3, %v2383_v14 }
0x100f   : > { %4296 = vmatmul.mubr.msk.f32.vlgmr.msra.gmra.mxu1 %vm764_vm3, %v2384_v15 }
0x1010   : > { %4299 = vmatpush3.xpose.msk.msra.mxu1 %vm672_vm1, %v2479_v41  ;;  %4302 = vmatprep.mubr.msk.f32.mxu1 %vm672_vm1, %v2473_v16 }
0x1011   : > { %4300 = vmatprep.subr.msk.mxu1 %vm672_vm1, %v2477_v17 }
0x1014   : > { %4301 = vmatpush3.xpose.msk.msra.mxu1 %vm672_vm1, %v2477_v17 }
0x1015   : > { %4317 = vmatprep.subr.mxu1 %v3948_v5 }
0x1017   : > { %4303 = vmatmul.mubr.msk.f32.vlgmr.msra.gmra.mxu1 %vm672_vm1, %v2475_v18 }
0x1018   : > { %4318 = vmatpush3.msra.mxu1 %v3948_v5 }
0x10cf   : > { %v4297_v4 = vpop.f32.mrf.mxu1 }
0x10d1   : > { %v2463_v20 = vpop.f32.mrf.mxu1 }
0x10d2   : > { %4319 = vmatprep.mubr.msk.f32.mxu1 %vm672_vm1, %v2463_v20 }
0x10d3   : > { %4320 = vmatmul.mubr.msk.f32.vlgmr.msra.gmra.mxu1 %vm672_vm1, %v4297_v4 }
0x10d7   : > { %v4304_v21 = vpop.f32.mrf.mxu1 }
0x10d8   : > { %v2564_v23 = vmul.f32 0.35355338, %v4304_v21 }
0x10d9   : > { %v2554_v24 = vpop.f32.mrf.mxu1 }
0x10da   : > { %vm2566_vm8 = vcmp.eq.f32.partialorder %v2564_v23, 0.0  ;;  %v2563_v25 = vmul.f32 0.35355338, %v2554_v24 }
0x10db   : > { %v2568_v26 = vsel %vm2566_vm8, -inf, %v2564_v23 }
0x10dc   : > { %vm2565_vm9 = vcmp.eq.f32.partialorder %v2563_v25, 0.0  ;;  %v2570_v28 = vadd.f32 %v4953_v27, %v2568_v26 }
0x10dd   : > { %v2567_v29 = vsel %vm2565_vm9, -inf, %v2563_v25 }
0x10de   : > { %v2574_v30 = vsel %vm764_vm3, %v2570_v28, -inf  ;;  %v2569_v32 = vadd.f32 %v4958_v31, %v2567_v29 }
0x10df   : > { %2575 = vmax.xlane.f32.xlu1 %v2574_v30 }
0x10e0   : > { %v2571_v8 = vsel %vm764_vm3, %v2569_v32, -inf }
0x10e1   : > { %2572 = vmax.xlane.f32.xlu0 %v2571_v8 }
0x10f0   : > { %2603 = vrot.lane.b32.xlu1 %v4905_v43, %s5174_s0 }
0x10f4   : > { %2856 = vrot.lane.b32.xlu1 %v4905_v43, %s5175_s1 }
0x10f8   : > { %2854 = vrot.lane.b32.xlu1 %v4907_v45, %s5175_s1 }
0x10fc   : > { %2852 = vrot.lane.b32.xlu1 %v4905_v43, %s5176_s18 }
0x1100   : > { %3153 = vrot.lane.b32.xlu1 %v4907_v45, %s5177_s20 }
0x1104   : > { %3151 = vrot.lane.b32.xlu1 %v4905_v43, %s5178_s30 }
0x1168   : > { %v2576_v33 = vpop.xlane.xlu1 %2575 }
0x1169   : > { %vm2578_vm10 = vcmp.eq.f32.partialorder %v2576_v33, -inf }
0x116a   : > { %v2580_v34 = vsel %vm2578_vm10, 0.0, %v2576_v33  ;;  %v2573_v35 = vpop.xlane.xlu0 %2572 }
0x116b   : > { %v2582_v36 = vsub.f32 %v2570_v28, %v2580_v34  ;;  %vm2577_vm11 = vcmp.eq.f32.partialorder %v2573_v35, -inf }
0x116c   : > { %v2579_v39 = vsel %vm2577_vm11, 0.0, %v2573_v35  ;;  %v2604_v40 = vpop.permute.xlu1 %2603 }
0x116d   : > { %v2585_v44 = vmul.f32 1.442695, %v2582_v36  ;;  %v2581_v46 = vsub.f32 %v2569_v32, %v2579_v39  ;;  %4305 = vmatprep.subr.mxu0 %v2604_v40 }
0x116e   : > { %4306 = vmatpush3.msra.mxu0 %v2604_v40 }
0x116f   : > { %4474 = vpow2.f32 %v2585_v44  ;;  %v2583_v47 = vmul.f32 1.442695, %v2581_v46 }
0x1170   : > { %v2857_v60 = vpop.permute.xlu1 %2856 }
0x1171   : > { %4476 = vpow2.f32 %v2583_v47 }
0x1174   : > { %v2855_v22 = vpop.permute.xlu1 %2854 }
0x1178   : > { %v2853_v1 = vpop.permute.xlu1 %2852 }
0x117c   : > { %v4475_v48 = vpop.eup %4474  ;;  %v3154_v42 = vpop.permute.xlu1 %3153 }
0x117d   : > { %v2590_v49 = vsel %vm764_vm3, %v4475_v48, 0.0 }
0x117e   : > { %v4477_v50 = vpop.eup %4476  ;;  %2591 = vadd.xlane.f32.xlu0 %v2590_v49 }
0x117f   : > { %v2587_v10 = vsel %vm764_vm3, %v4477_v50, 0.0 }
0x1180   : > { %v3152_v41 = vpop.permute.xlu1 %3151 }
0x1182   : > { %2588 = vadd.xlane.f32.xlu0 %v2587_v10 }
0x1198   : > { %2601 = vrot.lane.b32.xlu0 %v4907_v45, %s5174_s0  ;;  %s564_s0 = scalar_lea.vmem %s5155_s17, %s5182_s25 }
0x119c   : > { %2850 = vrot.lane.b32.xlu0 %v4907_v45, %s5176_s18 }
0x11a0   : > { %3155 = vrot.lane.b32.xlu0 %v4905_v43, %s5177_s20 }
0x11a4   : > { %3149 = vrot.lane.b32.xlu0 %v4907_v45, %s5178_s30 }
0x1207   : > { %v2592_v51 = vpop.xlane.xlu0 %2591 }
0x1208   : > { %4478 = vrcp.f32 %v2592_v51  ;;  %vm2594_vm12 = vcmp.gt.f32.partialorder %v2592_v51, 0.0 }
0x120b   : > { %v2589_v52 = vpop.xlane.xlu0 %2588 }
0x120c   : > { %4480 = vrcp.f32 %v2589_v52  ;;  %vm2593_vm13 = vcmp.gt.f32.partialorder %v2589_v52, 0.0 }
0x120f   : > { %v2602_v53 = vpop.permute.xlu0 %2601 }
0x1210   : > { %4307 = vmatprep.subr.mxu0 %v2602_v53 }
0x1211   : > { %4308 = vmatpush3.msra.mxu0 %v2602_v53 }
0x1212   : > { %4312 = vmatprep.subr.mxu0 %v3949_v54 }
0x1213   : > { %v2851_v61 = vpop.permute.xlu0 %2850 }
0x1215   : > { %v4479_v55 = vpop.eup %4478 }
0x1216   : > { %v2598_v57 = vsel %vm2594_vm12, %v4479_v55, 0.0 }
0x1217   : > { %v2600_v19 = vmul.f32 %v4475_v48, %v2598_v57  ;;  %v3156_v0 = vpop.permute.xlu0 %3155 }
0x1219   : > { %v4481_v56 = vpop.eup %4480 }
0x121a   : > { %v2597_v58 = vsel %vm2593_vm13, %v4481_v56, 0.0  ;;  %v3950_v56 = vld [vmem:[%s5142_s4 + $0x30] sm:$0xff] }
0x121b   : > { %v2599_v59 = vmul.f32 %v4477_v50, %v2597_v58  ;;  %v3150_v2 = vpop.permute.xlu0 %3149 }
0x121d   : > { %4309 = vmatprep.mubr.msk.f32.mxu0 %vm764_vm3, %v2599_v59 }
0x121e   : > { %4310 = vmatmul.mubr.msk.f32.vlgmr.msra.gmra.mxu0 %vm764_vm3, %v2600_v19 }
0x121f   : > { %4313 = vmatpush3.msra.mxu0 %v3949_v54 }
0x1220   : > { %4322 = vmatprep.subr.msk.mxu0 %vm672_vm1, %v2857_v60 }
0x12de   : > { %v4311_v62 = vpop.f32.mrf.mxu0 }
0x12e0   : > { %v2679_v63 = vpop.f32.mrf.mxu0 }
0x12e1   : > { %4314 = vmatprep.mubr.msk.f32.mxu0 %vm672_vm1, %v2679_v63 }
0x12e2   : > { %4315 = vmatmul.mubr.msk.f32.vlgmr.msra.gmra.mxu0 %vm672_vm1, %v4311_v62 }
0x12e3   : > { %4323 = vmatpush3.xpose.msk.msra.mxu0 %vm672_vm1, %v2857_v60  ;;  %4326 = vmatprep.mubr.msk.f32.mxu0 %vm672_vm1, %v2851_v61 }
0x12e4   : > { %4324 = vmatprep.subr.msk.mxu0 %vm672_vm1, %v2855_v22 }
0x12e7   : > { %4325 = vmatpush3.xpose.msk.msra.mxu0 %vm672_vm1, %v2855_v22 }
0x12e8   : > { %4341 = vmatprep.subr.msk.mxu0 %vm672_vm1, %v3156_v0 }
0x12ea   : > { %4327 = vmatmul.mubr.msk.f32.vlgmr.msra.gmra.mxu0 %vm672_vm1, %v2853_v1 }
0x12eb   : > { %4342 = vmatpush3.xpose.msk.msra.mxu0 %vm672_vm1, %v3156_v0  ;;  %4345 = vmatprep.mubr.msk.f32.mxu0 %vm672_vm1, %v3150_v2 }
0x12ec   : > { %4343 = vmatprep.subr.msk.mxu0 %vm672_vm1, %v3154_v42 }
0x12ef   : > { %4344 = vmatpush3.xpose.msk.msra.mxu0 %vm672_vm1, %v3154_v42  ;;  %v4321_v42 = vpop.f32.mrf.mxu1 }
0x12f2   : > { %4346 = vmatmul.mubr.msk.f32.vlgmr.msra.gmra.mxu0 %vm672_vm1, %v3152_v41 }
0x13a2   : > { %v5003_v3 = vpop.f32.mrf.mxu0 }
0x13a4   : > { %v5005_v6 = vpop.f32.mrf.mxu0 }
0x13aa   : > { %v4328_v7 = vpop.f32.mrf.mxu0 }
0x13ab   : > { %v2942_v9 = vmul.f32 0.35355338, %v4328_v7  ;;  %v2841_v7 = vpop.f32.mrf.mxu1 }
0x13ac   : > { %v2932_v11 = vpop.f32.mrf.mxu0 }
0x13ad   : > { %vm2944_vm15 = vcmp.eq.f32.partialorder %v2942_v9, 0.0  ;;  %v2941_v12 = vmul.f32 0.35355338, %v2932_v11 }
0x13ae   : > { %v2946_v13 = vsel %vm2944_vm15, -inf, %v2942_v9 }
0x13af   : > { %vm2943_vm2 = vcmp.eq.f32.partialorder %v2941_v12, 0.0  ;;  %v2948_v14 = vadd.f32 %v4953_v27, %v2946_v13 }
0x13b0   : > { %v2945_v15 = vsel %vm2943_vm2, -inf, %v2941_v12 }
0x13b1   : > { %v2952_v16 = vsel %vm764_vm3, %v2948_v14, -inf  ;;  %v2947_v17 = vadd.f32 %v4958_v31, %v2945_v15 }
0x13b2   : > { %2953 = vmax.xlane.f32.xlu1 %v2952_v16  ;;  %v4347_v5 = vpop.f32.mrf.mxu0 }
0x13b3   : > { %v2949_v18 = vsel %vm764_vm3, %v2947_v17, -inf  ;;  %v3241_v48 = vmul.f32 0.35355338, %v4347_v5  ;;  %v2847_v5 = vadd.f32 %v4321_v42, %v5003_v3  ;;  %v4003_v42 = vld [vmem:[%s5148_s10 + $0x68] sm:$0xff] }
0x13b4   : > { %2950 = vmax.xlane.f32.xlu0 %v2949_v18  ;;  %v3231_v4 = vpop.f32.mrf.mxu0  ;;  %v3951_v18 = vld [vmem:[%s5142_s4 + $0x38] sm:$0xff] }
0x13b5   : > { %v3240_v20 = vmul.f32 0.35355338, %v3231_v4  ;;  %vm3243_vm8 = vcmp.eq.f32.partialorder %v3241_v48, 0.0 }
0x13b6   : > { %v3245_v49 = vsel %vm3243_vm8, -inf, %v3241_v48 }
0x13b7   : > { %vm3242_vm4 = vcmp.eq.f32.partialorder %v3240_v20, 0.0  ;;  %v3247_v51 = vadd.f32 %v4953_v27, %v3245_v49 }
0x13b8   : > { %v3244_v21 = vsel %vm3242_vm4, -inf, %v3240_v20  ;;  %v2842_v20 = vadd.f32 %v2841_v7, %v5005_v6  ;;  %v4001_v7 = vld [vmem:[%s5148_s10 + $0x58] sm:$0xff] }
0x13b9   : > { %v3246_v23 = vadd.f32 %v4958_v31, %v3244_v21  ;;  %v3251_v52 = vsel %vm764_vm3, %v3247_v51, -inf }
0x13bb   : > { %v3248_v24 = vsel %vm764_vm3, %v3246_v23, -inf }
0x13c3   : > { %2981 = vrot.lane.b32.xlu1 %v4905_v43, %s5179_s21 }
0x13e7   : > { %3249 = vmax.xlane.f32.xlu1 %v3248_v24 }
0x143b   : > { %v2954_v25 = vpop.xlane.xlu1 %2953 }
0x143c   : > { %vm2956_vm5 = vcmp.eq.f32.partialorder %v2954_v25, -inf }
0x143d   : > { %v2958_v26 = vsel %vm2956_vm5, 0.0, %v2954_v25  ;;  %v2951_v28 = vpop.xlane.xlu0 %2950 }
0x143e   : > { %v2960_v29 = vsub.f32 %v2948_v14, %v2958_v26  ;;  %vm2955_vm6 = vcmp.eq.f32.partialorder %v2951_v28, -inf }
0x143f   : > { %v2957_v30 = vsel %vm2955_vm6, 0.0, %v2951_v28  ;;  %v2982_v32 = vpop.permute.xlu1 %2981 }
0x1440   : > { %v2963_v8 = vmul.f32 1.442695, %v2960_v29  ;;  %v2959_v33 = vsub.f32 %v2947_v17, %v2957_v30  ;;  %4329 = vmatprep.subr.mxu1 %v2982_v32  ;;  %v3985_v29 = vld [vmem:[%s5143_s5 + $0x1] ss:$0 sm:$0xff] }
0x1441   : > { %4330 = vmatpush3.msra.mxu1 %v2982_v32 }
0x1442   : > { %4482 = vpow2.f32 %v2963_v8  ;;  %v2961_v34 = vmul.f32 1.442695, %v2959_v33 }
0x1444   : > { %4484 = vpow2.f32 %v2961_v34 }
0x144f   : > { %v4483_v35 = vpop.eup %4482 }
0x1450   : > { %v2968_v31 = vsel %vm764_vm3, %v4483_v35, 0.0 }
0x1451   : > { %v4485_v36 = vpop.eup %4484  ;;  %2969 = vadd.xlane.f32.xlu0 %v2968_v31 }
0x1452   : > { %v2965_v39 = vsel %vm764_vm3, %v4485_v36, 0.0 }
0x1455   : > { %2966 = vadd.xlane.f32.xlu0 %v2965_v39 }
0x146b   : > { %2979 = vrot.lane.b32.xlu0 %v4907_v45, %s5179_s21 }
0x1470   : > { %v3250_v40 = vpop.xlane.xlu1 %3249 }
0x1471   : > { %vm3254_vm7 = vcmp.eq.f32.partialorder %v3250_v40, -inf }
0x1472   : > { %v3256_v44 = vsel %vm3254_vm7, 0.0, %v3250_v40 }
0x1473   : > { %v3258_v46 = vsub.f32 %v3246_v23, %v3256_v44 }
0x1475   : > { %v3260_v47 = vmul.f32 1.442695, %v3258_v46 }
0x1477   : > { %4486 = vpow2.f32 %v3260_v47 }
0x1484   : > { %v4487_v50 = vpop.eup %4486 }
0x1485   : > { %v3264_v10 = vsel %vm764_vm3, %v4487_v50, 0.0 }
0x1486   : > { %3265 = vadd.xlane.f32.xlu1 %v3264_v10  ;;  %v3992_v10 = vld [vmem:[%s5146_s8 + $0x30] sm:$0xff] }
0x148a   : > { %3252 = vmax.xlane.f32.xlu0 %v3251_v52  ;;  %v3990_v52 = vld [vmem:[%s5146_s8 + $0x20] sm:$0xff] }
0x1497   : > { %3280 = vrot.lane.b32.xlu1 %v4905_v43, %s5180_s22 }
0x14da   : > { %v2970_v53 = vpop.xlane.xlu0 %2969 }
0x14db   : > { %4488 = vrcp.f32 %v2970_v53  ;;  %vm2972_vm9 = vcmp.gt.f32.partialorder %v2970_v53, 0.0 }
0x14de   : > { %v2967_v54 = vpop.xlane.xlu0 %2966 }
0x14df   : > { %4490 = vrcp.f32 %v2967_v54  ;;  %vm2971_vm10 = vcmp.gt.f32.partialorder %v2967_v54, 0.0 }
0x14e2   : > { %v2980_v55 = vpop.permute.xlu0 %2979 }
0x14e3   : > { %4331 = vmatprep.subr.mxu1 %v2980_v55 }
0x14e4   : > { %4332 = vmatpush3.msra.mxu1 %v2980_v55 }
0x14e5   : > { %4336 = vmatprep.subr.mxu1 %v3950_v56 }
0x14e8   : > { %v4489_v27 = vpop.eup %4488 }
0x14e9   : > { %v2976_v58 = vsel %vm2972_vm9, %v4489_v27, 0.0 }
0x14ea   : > { %v2978_v43 = vmul.f32 %v4483_v35, %v2976_v58 }
0x14ec   : > { %v4491_v57 = vpop.eup %4490 }
0x14ed   : > { %v2975_v59 = vsel %vm2971_vm10, %v4491_v57, 0.0 }
0x14ee   : > { %v2977_v19 = vmul.f32 %v4485_v36, %v2975_v59  ;;  %v3988_v59 = vld [vmem:[%s5144_s6 + $0x1] ss:$0 sm:$0xff] }
0x14f0   : > { %4333 = vmatprep.mubr.msk.f32.mxu1 %vm764_vm3, %v2977_v19 }
0x14f1   : > { %4334 = vmatmul.mubr.msk.f32.vlgmr.msra.gmra.mxu1 %vm764_vm3, %v2978_v43 }
0x14f2   : > { %4337 = vmatpush3.msra.mxu1 %v3950_v56 }
0x150f   : > { %v3266_v60 = vpop.xlane.xlu1 %3265 }
0x1510   : > { %vm3270_vm12 = vcmp.gt.f32.partialorder %v3266_v60, 0.0 }
0x1513   : > { %v3281_v61 = vpop.permute.xlu1 %3280  ;;  %v3253_v62 = vpop.xlane.xlu0 %3252 }
0x1514   : > { %vm3255_vm11 = vcmp.eq.f32.partialorder %v3253_v62, -inf  ;;  %4348 = vmatprep.subr.mxu1 %v3281_v61 }
0x1515   : > { %v3257_v22 = vsel %vm3255_vm11, 0.0, %v3253_v62  ;;  %v3989_v62 = vld [vmem:[%s5145_s7 + $0x1] ss:$0 sm:$0xff] }
0x1516   : > { %v3259_v63 = vsub.f32 %v3247_v51, %v3257_v22  ;;  %v3991_v51 = vld [vmem:[%s5146_s8 + $0x28] sm:$0xff] }
0x1518   : > { %v3262_v0 = vmul.f32 1.442695, %v3259_v63 }
0x151a   : > { %4492 = vpow2.f32 %v3262_v0 }
0x151b   : > { %4494 = vrcp.f32 %v3266_v60 }
0x1527   : > { %v4493_v1 = vpop.eup %4492 }
0x1528   : > { %v3267_v2 = vsel %vm764_vm3, %v4493_v1, 0.0  ;;  %v4495_v41 = vpop.eup %4494 }
0x1529   : > { %3268 = vadd.xlane.f32.xlu0 %v3267_v2  ;;  %v3274_v9 = vsel %vm3270_vm12, %v4495_v41, 0.0  ;;  %v4004_v2 = vld [vmem:[%s5148_s10 + $0x70] sm:$0xff]  ;;  %v4002_v41 = vld [vmem:[%s5148_s10 + $0x60] sm:$0xff] }
0x152a   : > { %v3276_v14 = vmul.f32 %v4487_v50, %v3274_v9  ;;  %v4000_v9 = vld [vmem:[%s5148_s10 + $0x50] sm:$0xff] }
0x153f   : > { %3278 = vrot.lane.b32.xlu0 %v4907_v45, %s5180_s22 }
0x15b1   : > { %v4335_v11 = vpop.f32.mrf.mxu1 }
0x15b2   : > { %v3269_v12 = vpop.xlane.xlu0 %3268 }
0x15b3   : > { %4496 = vrcp.f32 %v3269_v12  ;;  %v3057_v13 = vpop.f32.mrf.mxu1  ;;  %vm3271_vm13 = vcmp.gt.f32.partialorder %v3269_v12, 0.0  ;;  %v3998_v12 = vld [vmem:[%s5148_s10 + $0x40] sm:$0xff] }
0x15b4   : > { %4338 = vmatprep.mubr.msk.f32.mxu1 %vm672_vm1, %v3057_v13  ;;  %v3995_v13 = vld [vmem:[%s5147_s9 + $0x1] ss:$0 sm:$0xff] }
0x15b5   : > { %4339 = vmatmul.mubr.msk.f32.vlgmr.msra.gmra.mxu1 %vm672_vm1, %v4335_v11  ;;  %v3999_v11 = vld [vmem:[%s5148_s10 + $0x48] sm:$0xff] }
0x15b6   : > { %4349 = vmatpush3.msra.mxu1 %v3281_v61  ;;  %4352 = vmatprep.mubr.msk.f32.mxu1 %vm764_vm3, %v3276_v14  ;;  %v3279_v15 = vpop.permute.xlu0 %3278 }
0x15b7   : > { %4350 = vmatprep.subr.mxu1 %v3279_v15 }
0x15b8   : > { %4351 = vmatpush3.msra.mxu1 %v3279_v15 }
0x15b9   : > { %4355 = vmatprep.subr.mxu1 %v3951_v18 }
0x15c0   : > { %v4497_v45 = vpop.eup %4496 }
0x15c1   : > { %v3275_v16 = vsel %vm3271_vm13, %v4497_v45, 0.0 }
0x15c2   : > { %v3277_v17 = vmul.f32 %v4493_v1, %v3275_v16  ;;  %v4005_v1 = vld [vmem:[%s5148_s10 + $0x78] sm:$0xff] }
0x15c4   : > { %4353 = vmatmul.mubr.msk.f32.vlgmr.msra.gmra.mxu1 %vm764_vm3, %v3277_v17  ;;  %vm3820_vm3 = vcmask 516096  }
0x15c5   : > { %4356 = vmatpush3.msra.mxu1 %v3951_v18 }
0x15c6   : > { %4371 = vmatprep.subr.mxu1 %v4005_v1 }
0x1675   : > { %v4340_v4 = vpop.f32.mrf.mxu1 }
0x1676   : > { %v3148_v21 = vadd.f32 %v4340_v4, %v2847_v5 }
0x1677   : > { %v3138_v23 = vpop.f32.mrf.mxu1 }
0x1678   : > { %v3147_v24 = vadd.f32 %v3138_v23, %v2842_v20 }
0x1684   : > { %v4354_v25 = vpop.f32.mrf.mxu1 }
0x1686   : > { %v3356_v26 = vpop.f32.mrf.mxu1 }
0x1687   : > { %4357 = vmatprep.mubr.msk.f32.mxu1 %vm672_vm1, %v3356_v26 }
0x1688   : > { %4358 = vmatmul.mubr.msk.f32.vlgmr.msra.gmra.mxu1 %vm672_vm1, %v4354_v25  ;;  %vm4532_vm1 = vmmov 0  }
0x1689   : > { %4372 = vmatpush3.msra.mxu1 %v4005_v1 }
0x168a   : > { %4373 = vmatprep.subr.mxu1 %v4004_v2 }
0x168b   : > { %4374 = vmatpush3.msra.mxu1 %v4004_v2 }
0x168c   : > { %4375 = vmatprep.subr.mxu1 %v4003_v42 }
0x168d   : > { %4376 = vmatpush3.msra.mxu1 %v4003_v42 }
0x168e   : > { %4377 = vmatprep.subr.mxu1 %v4002_v41 }
0x168f   : > { %4378 = vmatpush3.msra.mxu1 %v4002_v41 }
0x1690   : > { %4379 = vmatprep.subr.mxu1 %v4001_v7 }
0x1691   : > { %4380 = vmatpush3.msra.mxu1 %v4001_v7 }
0x1692   : > { %4381 = vmatprep.subr.mxu1 %v4000_v9 }
0x1693   : > { %4382 = vmatpush3.msra.mxu1 %v4000_v9 }
0x1694   : > { %4383 = vmatprep.subr.mxu1 %v3999_v11 }
0x1695   : > { %4384 = vmatpush3.msra.mxu1 %v3999_v11 }
0x1696   : > { %4385 = vmatprep.subr.mxu1 %v3998_v12 }
0x1697   : > { %4386 = vmatpush3.msra.mxu1 %v3998_v12 }
0x1748   : > { %v4359_v28 = vpop.f32.mrf.mxu1 }
0x1749   : > { %v3447_v30 = vadd.f32 %v4359_v28, %v3148_v21 }
0x174a   : > { %v3437_v32 = vpop.f32.mrf.mxu1 }
0x174b   : > { %v3457_v3 = vadd.f32 %v3985_v29, %v3447_v30  ;;  %v3446_v8 = vadd.f32 %v3437_v32, %v3147_v24 }
0x174d   : > { %v3456_v33 = vadd.f32 %v3985_v29, %v3446_v8  ;;  %v3459_v6 = vadd.f32 %v3457_v3, %v4896_v38  ;;  %v4007_v29 = vld [vmem:[%s5149_s11 + $0x1] ss:$0 sm:$0xff] }
0x174f   : > { %v3467_v34 = vsel %vm580_vm0, %v3459_v6, 0.0  ;;  %v3458_v35 = vadd.f32 %v3456_v33, %v4894_v37  ;;  %v3993_v37 = vld [vmem:[%s5146_s8 + $0x38] sm:$0xff] }
0x1750   : > { %3468 = vadd.xlane.f32.xlu0 %v3467_v34  ;;  %4360 = vmatprep.subr.mxu0 %v3993_v37 }
0x1751   : > { %v3464_v31 = vsel %vm580_vm0, %v3458_v35, 0.0  ;;  %4361 = vmatpush3.msra.mxu0 %v3993_v37 }
0x1752   : > { %3465 = vadd.xlane.f32.xlu1 %v3464_v31  ;;  %4362 = vmatprep.subr.mxu0 %v3992_v10 }
0x1753   : > { %4363 = vmatpush3.msra.mxu0 %v3992_v10  ;;  %v4013_v10 = vld [vmem:[%s5151_s13 + $0x1] ss:$0 sm:$0xff] }
0x1754   : > { %4364 = vmatprep.subr.mxu0 %v3991_v51 }
0x1755   : > { %4365 = vmatpush3.msra.mxu0 %v3991_v51 }
0x1756   : > { %4366 = vmatprep.subr.mxu0 %v3990_v52 }
0x1757   : > { %4367 = vmatpush3.msra.mxu0 %v3990_v52 }
0x17d9   : > { %v3469_v36 = vpop.xlane.xlu0 %3468 }
0x17da   : > { %v3471_v39 = vmul.f32 0.03125, %v3469_v36  ;;  %v4531_v36 = vmov 0.0  }
0x17db   : > { %v3466_v40 = vpop.xlane.xlu1 %3465  ;;  %4390 = vmatprep.subr.mxu0 %v4531_v36 }
0x17dc   : > { %v3473_v44 = vsub.f32 %v3459_v6, %v3471_v39  ;;  %v3470_v46 = vmul.f32 0.03125, %v3466_v40  ;;  %v3742_v39 = vld [vmem:[%s5152_s14 + $0x18] sm:$0xff]  ;;  %v3741_v40 = vld [vmem:[%s5152_s14 + $0x10] sm:$0xff] }
0x17de   : > { %v3472_v47 = vsub.f32 %v3458_v35, %v3470_v46  ;;  %v3475_v48 = vmul.f32 %v3473_v44, %v3473_v44  ;;  %v3739_v46 = vld [vmem:[%s5152_s14] sm:$0xff] }
0x17e0   : > { %v3479_v49 = vsel %vm580_vm0, %v3475_v48, 0.0  ;;  %v3474_v50 = vmul.f32 %v3472_v47, %v3472_v47 }
0x17e1   : > { %3480 = vadd.xlane.f32.xlu0 %v3479_v49 }
0x17e2   : > { %v3476_v38 = vsel %vm580_vm0, %v3474_v50, 0.0 }
0x17e3   : > { %3477 = vadd.xlane.f32.xlu1 %v3476_v38  ;;  %v4012_v38 = vld [vmem:[%s5150_s12 + $0x1] ss:$0 sm:$0xff] }
0x186a   : > { %v3481_v53 = vpop.xlane.xlu0 %3480 }
0x186b   : > { %v3483_v54 = vmul.f32 0.03125, %v3481_v53  ;;  %v3743_v53 = vld [vmem:[%s5153_s15] sm:$0x1] }
0x186c   : > { %v3478_v55 = vpop.xlane.xlu1 %3477 }
0x186d   : > { %v3485_v56 = vadd.f32 1e-05, %v3483_v54  ;;  %v3482_v27 = vmul.f32 0.03125, %v3478_v55 }
0x186f   : > { %4498 = vrsqrt.f32 %v3485_v56  ;;  %v3484_v57 = vadd.f32 1e-05, %v3482_v27  ;;  %v3818_v27 = vld [vmem:[%s5154_s16] sm:$0x1] }
0x1871   : > { %4500 = vrsqrt.f32 %v3484_v57 }
0x187c   : > { %v4499_v58 = vpop.eup %4498 }
0x187d   : > { %v3489_v19 = vmul.f32 %v4499_v58, %v3473_v44  ;;  %v3740_v44 = vld [vmem:[%s5152_s14 + $0x8] sm:$0xff] }
0x187e   : > { %v4501_v43 = vpop.eup %4500 }
0x187f   : > { %v3488_v60 = vmul.f32 %v4501_v43, %v3472_v47  ;;  %v3497_v61 = vmul.f32 %v3988_v59, %v3489_v19 }
0x1881   : > { %v3496_v22 = vmul.f32 %v3988_v59, %v3488_v60  ;;  %v3505_v0 = vadd.f32 %v3989_v62, %v3497_v61 }
0x1883   : > { %v3504_v63 = vadd.f32 %v3989_v62, %v3496_v22 }
0x1885   : > { %4368 = vmatprep.mubr.msk.f32.mxu0 %vm580_vm0, %v3504_v63 }
0x1886   : > { %4369 = vmatmul.mubr.msk.f32.vlgmr.msra.gmra.mxu0 %vm580_vm0, %v3505_v0 }
0x1887   : > { %4391 = vmatpush3.msra.mxu0 %v3742_v39  ;;  %4398 = vmatprep.mubr.msk.f32.mxu0 %vm4532_vm1, %v4531_v36 }
0x1888   : > { %4392 = vmatprep.subr.mxu0 %v4531_v36 }
0x1889   : > { %4393 = vmatpush3.msra.mxu0 %v3741_v40 }
0x188a   : > { %4394 = vmatprep.subr.mxu0 %v4531_v36 }
0x188b   : > { %4395 = vmatpush3.msra.mxu0 %v3740_v44 }
0x188c   : > { %4396 = vmatprep.subr.mxu0 %v4531_v36 }
0x188d   : > { %4397 = vmatpush3.msra.mxu0 %v3739_v46 }
0x1946   : > { %v4370_v14 = vpop.f32.mrf.mxu0 }
0x1947   : > { %v3597_v15 = vadd.f32 %v4370_v14, %v3995_v13 }
0x1948   : > { %v3591_v45 = vpop.f32.mrf.mxu0 }
0x1949   : > { %v3603_v16 = vmul.f32 0.70710677, %v3597_v15  ;;  %v3592_v17 = vadd.f32 %v3995_v13, %v3591_v45  ;;  %v3601_v24 = vmul.f32 0.5, %v3597_v15 }
0x194b   : > { %4502 = verf.f32 %v3603_v16  ;;  %v3602_v18 = vmul.f32 0.70710677, %v3592_v17  ;;  %v3600_v21 = vmul.f32 0.5, %v3592_v17 }
0x194d   : > { %4504 = verf.f32 %v3602_v18 }
0x1958   : > { %v4503_v5 = vpop.eup %4502 }
0x1959   : > { %v3607_v20 = vadd.f32 1.0, %v4503_v5 }
0x195a   : > { %v4505_v4 = vpop.eup %4504 }
0x195b   : > { %v3606_v23 = vadd.f32 1.0, %v4505_v4  ;;  %v3609_v26 = vmul.f32 %v3607_v20, %v3601_v24 }
0x195d   : > { %v3608_v25 = vmul.f32 %v3606_v23, %v3600_v21 }
0x195f   : > { %4387 = vmatprep.mubr.msk.f32.mxu1 %vm2031_vm14, %v3608_v25 }
0x1960   : > { %4388 = vmatmul.mubr.msk.f32.vlgmr.msra.gmra.mxu1 %vm2031_vm14, %v3609_v26 }
0x1a20   : > { %v4389_v28 = vpop.f32.mrf.mxu1 }
0x1a22   : > { %v3699_v30 = vpop.f32.mrf.mxu1 }
0x1a23   : > { %v3700_v32 = vadd.f32 %v4007_v29, %v3699_v30 }
0x1a25   : > { %v3707_v3 = vadd.f32 %v3700_v32, %v3504_v63 }
0x1a27   : > { %v3712_v8 = vsel %vm580_vm0, %v3707_v3, 0.0 }
0x1a28   : > { %3713 = vadd.xlane.f32.xlu1 %v3712_v8 }
0x1ab1   : > { %v3714_v33 = vpop.xlane.xlu1 %3713 }
0x1ab2   : > { %v3715_v6 = vmul.f32 0.03125, %v3714_v33 }
0x1ab4   : > { %v3716_v34 = vsub.f32 %v3707_v3, %v3715_v6 }
0x1ab6   : > { %v3717_v35 = vmul.f32 %v3716_v34, %v3716_v34 }
0x1ab8   : > { %v3718_v31 = vsel %vm580_vm0, %v3717_v35, 0.0 }
0x1ab9   : > { %3719 = vadd.xlane.f32.xlu0 %v3718_v31 }
0x1b42   : > { %v3720_v47 = vpop.xlane.xlu0 %3719 }
0x1b43   : > { %v3721_v48 = vmul.f32 0.03125, %v3720_v47 }
0x1b45   : > { %v3722_v49 = vadd.f32 1e-05, %v3721_v48 }
0x1b47   : > { %4506 = vrsqrt.f32 %v3722_v49 }
0x1b54   : > { %v4507_v50 = vpop.eup %4506 }
0x1b55   : > { %v3724_v37 = vmul.f32 %v4507_v50, %v3716_v34 }
0x1b57   : > { %v3731_v51 = vmul.f32 %v4012_v38, %v3724_v37 }
0x1b59   : > { %v3738_v52 = vadd.f32 %v4013_v10, %v3731_v51 }
0x1b5b   : > { %4399 = vmatmul.mubr.msk.f32.vlgmr.msra.gmra.mxu0 %vm580_vm0, %v3738_v52  ;;  %vm3824_vm0 = vcmask 0  }
0x1c1b   : > { %v3813_v54 = vpop.f32.mrf.mxu0 }
0x1c1c   : > { %v3814_v55 = vadd.f32 %v3813_v54, %v3743_v53 }
0x1c1d   : > { %v4400_v56 = vpop.f32.mrf.mxu0 }
0x1c1e   : > { %4508 = vtanh.f32 %v3814_v55 }
0x1c2b   : > { %v4509_v57 = vpop.eup %4508 }
0x1c2c   : > { %v3819_v58 = vmul.f32 %v4509_v57, %v3818_v27 }
0x1c2e   : > { %v3821_v59 = vsel %vm3820_vm3, %v3819_v58, 0.0 }
0x1c2f   : > { %3822 = vadd.xlane.f32.xlu1 %v3821_v59 }
0x1cb8   : > { %v3823_v19 = vpop.xlane.xlu1 %3822 }
0x1cb9   : > { %3825 = vst.msk [vmem:[%s564_s0] sm:$0x1] %vm3824_vm0, %v3823_v19 }
0x1cba PF: > { %s27_s24 = sadd.s32 1, %s4518_s24  }
0x1cbb   : > { %p24_p4 = scmp.ge.s32.totalorder %s27_s24, 4  }
0x1cbd   :  { %26 = sbr.rel (!%p24_p4) target bundleno = 3 (0x3), region = 133 }

</bundles_post_ra>
